<compile_context>
chip_gen: v6e
topology: v6e:2x2x1
jax: 0.10.0
libtpu: 0.0.40
codegen_flags: <defaults>
</compile_context>

<pallas_src>
import jax
import jax.numpy as jnp
from jax.experimental import pallas as pl
from jax.experimental.pallas import tpu as pltpu

BN_EPS = 1e-5
_VMEM_LIMIT = 48 * 1024 * 1024        # safe on v5e/v6e (128 MiB) and v7x (64 MiB)
_TILE_TARGET_BYTES = 2 << 20          # ~2 MiB of in+out bytes per grid step


def _make_kernels(kh, kw, dilation, wp, l_out, cout, imgs_per_tile, m_total):
    """Build (stats_kernel, apply_kernel) for the stride-1 conv+BN+relu path."""
    n_taps = kh * kw
    inv_m = 1.0 / float(m_total)

    def conv_tile(w_ref, x_ref, b):
        # KxK conv decomposed into kh*kw matmuls on statically lane-shifted
        # views of image b's flattened padded input (no im2col in HBM).
        # bf16 operands on the MXU, f32 accumulation.
        y = jnp.zeros((cout, l_out), dtype=jnp.float32)
        for t in range(n_taps):
            di, dj = t // kw, t % kw
            off = dilation * (di * wp + dj)                 # static lane offset
            xs = x_ref[b, :, off:off + l_out]               # (Cin, l_out) bf16
            y = y + jnp.dot(w_ref[t], xs, preferred_element_type=jnp.float32)
        return y

    def stats_kernel(w_ref, gamma_ref, beta_ref, mask_ref, x_ref, ss_ref,
                     sum_ref, ssq_ref):
        """Per-channel batch statistics -> fused BN scale/shift (Cout, 2)."""
        i = pl.program_id(0)

        @pl.when(i == 0)
        def _init():
            sum_ref[...] = jnp.zeros_like(sum_ref)
            ssq_ref[...] = jnp.zeros_like(ssq_ref)
            ss_ref[...] = jnp.zeros_like(ss_ref)

        # mask (1, l_out) zeroes the padding columns interleaved in the flat
        # layout so BN statistics only see real output positions.
        m = mask_ref[...]
        for b in range(imgs_per_tile):
            y = conv_tile(w_ref, x_ref, b)
            yv = y * m
            sum_ref[...] += jnp.sum(yv, axis=1, keepdims=True)      # lane reduce
            ssq_ref[...] += jnp.sum(yv * y, axis=1, keepdims=True)  # mask * y^2

        @pl.when(i == pl.num_programs(0) - 1)
        def _finalize():
            mean = sum_ref[...] * inv_m
            var = ssq_ref[...] * inv_m - mean * mean        # biased variance
            scale = gamma_ref[...] * jax.lax.rsqrt(var + BN_EPS)
            shift = beta_ref[...] - mean * scale
            ss_ref[:, 0:1] = scale
            ss_ref[:, 1:2] = shift

    def apply_kernel(w_ref, ss_ref, x_ref, o_ref):
        """Recompute conv tile, apply fused BN scale/shift + relu, store."""
        scale = ss_ref[:, 0:1]
        shift = ss_ref[:, 1:2]
        for b in range(imgs_per_tile):
            y = conv_tile(w_ref, x_ref, b)
            # Lane-dense (Cout, L) store; interleaved padding columns carry
            # junk and are sliced away in the wrapper.  act = 'relu'.
            o_ref[b] = jnp.maximum(y * scale + shift, 0.0).astype(o_ref.dtype)

    return stats_kernel, apply_kernel


def conv_bn_layer(x, weight, gamma, beta, *, stride=1, dilation=1,
                  out_dtype=jnp.float32):
    """ConvBNLayer.forward for the non-DCN / non-vd path with act='relu'.

    x:      (N, Cin, H, W)      float32, NCHW
    weight: (Cout, Cin, kh, kw) float32 (PyTorch Conv2d layout, bias=False)
    gamma, beta: (Cout,)        BatchNorm2d affine params
    """
    assert stride == 1, "TODO(synk): stride > 1 path not implemented"
    N, Cin, H, W = x.shape
    Cout, Cin_w, kh, kw = weight.shape
    assert Cin_w == Cin, "TODO(synk): groups > 1 not implemented"

    pad = (kh - 1) // 2                         # module default padding
    hp, wp = H + 2 * pad, W + 2 * pad
    hout = hp - dilation * (kh - 1)
    wout = wp - dilation * (kw - 1)
    assert hout > 0 and wout > 0
    l_out = hout * wp                           # flat output length (row stride wp)
    m_total = N * hout * wout                   # BN batch-statistics population

    # ---- single-pass layout prep in XLA: one cast + ONE pad + free reshape --
    # Extra bottom rows give the last conv taps valid (zero) memory to read,
    # replacing a separate flat tail pad.
    tail = dilation * (kw - 1)
    extra_rows = -(-tail // wp) if tail > 0 else 0
    l_in = (hp + extra_rows) * wp
    xb = x.astype(jnp.bfloat16)                 # bf16 MXU operands, f32 accumulate
    xp = jnp.pad(xb, ((0, 0), (0, 0), (pad, pad + extra_rows), (pad, pad)))
    xflat = xp.reshape(N, Cin, l_in)

    # weight (Cout, Cin, kh, kw) -> (kh*kw, Cout, Cin): one (Cout, Cin) slab/tap
    w_taps = jnp.transpose(weight, (2, 3, 0, 1)).reshape(kh * kw, Cout, Cin)
    w_taps = w_taps.astype(jnp.bfloat16)

    gamma2 = gamma.reshape(Cout, 1).astype(jnp.float32)
    beta2 = beta.reshape(Cout, 1).astype(jnp.float32)

    # 1.0 for real output columns, 0.0 for interleaved padding columns.
    mask = ((jnp.arange(l_out) % wp) < wout).astype(jnp.float32).reshape(1, l_out)

    # ---- images per grid step: largest divisor of N under the tile target ---
    out_bytes = jnp.dtype(out_dtype).itemsize
    per_img = Cin * l_in * 2 + Cout * l_out * out_bytes
    b_cap = max(1, _TILE_TARGET_BYTES // per_img)
    imgs_per_tile = 1
    for d_ in range(1, N + 1):
        if N % d_ == 0 and d_ <= b_cap:
            imgs_per_tile = d_
    n_tiles = N // imgs_per_tile

    stats_kernel, apply_kernel = _make_kernels(
        kh, kw, dilation, wp, l_out, Cout, imgs_per_tile, m_total)

    # ---- pass 1: batch statistics -> fused per-channel scale/shift ----------
    scale_shift = pl.pallas_call(
        stats_kernel,
        out_shape=jax.ShapeDtypeStruct((Cout, 2), jnp.float32),
        grid=(n_tiles,),
        in_specs=[
            pl.BlockSpec((kh * kw, Cout, Cin), lambda i: (0, 0, 0)),     # weights
            pl.BlockSpec((Cout, 1), lambda i: (0, 0)),                   # gamma
            pl.BlockSpec((Cout, 1), lambda i: (0, 0)),                   # beta
            pl.BlockSpec((1, l_out), lambda i: (0, 0)),                  # valid mask
            pl.BlockSpec((imgs_per_tile, Cin, l_in), lambda i: (i, 0, 0)),  # x tile
        ],
        # Constant block index -> output stays resident, written back once.
        out_specs=pl.BlockSpec((Cout, 2), lambda i: (0, 0)),
        scratch_shapes=[
            pltpu.VMEM((Cout, 1), jnp.float32),   # running per-channel sum
            pltpu.VMEM((Cout, 1), jnp.float32),   # running per-channel sum of sq.
        ],
        compiler_params=pltpu.CompilerParams(
            dimension_semantics=("arbitrary",),   # sequential reduction over tiles
            vmem_limit_bytes=_VMEM_LIMIT,
        ),
    )(w_taps, gamma2, beta2, mask, xflat)

    # ---- pass 2: recompute conv, apply fused BN scale/shift + relu ----------
    out_flat = pl.pallas_call(
        apply_kernel,
        out_shape=jax.ShapeDtypeStruct((N, Cout, l_out), out_dtype),
        grid=(n_tiles,),
        in_specs=[
            pl.BlockSpec((kh * kw, Cout, Cin), lambda i: (0, 0, 0)),     # weights
            pl.BlockSpec((Cout, 2), lambda i: (0, 0)),                   # scale/shift
            pl.BlockSpec((imgs_per_tile, Cin, l_in), lambda i: (i, 0, 0)),  # x tile
        ],
        out_specs=pl.BlockSpec((imgs_per_tile, Cout, l_out), lambda i: (i, 0, 0)),
        compiler_params=pltpu.CompilerParams(
            dimension_semantics=("parallel",),    # independent tiles (v7x 2-TC)
            vmem_limit_bytes=_VMEM_LIMIT,
        ),
    )(w_taps, scale_shift, xflat)

    # Channel-major compute layout means the result is already NCHW: just drop
    # the interleaved padding columns (no NHWC->NCHW transpose pass).
    out = out_flat.reshape(N, Cout, hout, wp)[:, :, :, :wout]
    return out


def _reference(x, weight, gamma, beta, *, stride=1, dilation=1):
    """Pure-JAX reference: Conv2d(no bias) + BatchNorm2d(train) + relu."""
    kh = weight.shape[2]
    pad = (kh - 1) // 2
    y = jax.lax.conv_general_dilated(
        x, weight,
        window_strides=(stride, stride),
        padding=[(pad, pad), (pad, pad)],
        rhs_dilation=(dilation, dilation),
        dimension_numbers=("NCHW", "OIHW", "NCHW"),
    )
    mean = jnp.mean(y, axis=(0, 2, 3), keepdims=True)
    var = jnp.mean((y - mean) ** 2, axis=(0, 2, 3), keepdims=True)
    y = (y - mean) * jax.lax.rsqrt(var + BN_EPS)
    y = y * gamma.reshape(1, -1, 1, 1) + beta.reshape(1, -1, 1, 1)
    return jnp.maximum(y, 0.0)


if __name__ == "__main__":
    # Small shapes consistent with the module.
    N, Cin, H, W = 2, 4, 16, 16
    Cout, ksize = 8, 3

    key = jax.random.PRNGKey(0)
    kx, kw_, kg, kb = jax.random.split(key, 4)
    x = jax.random.normal(kx, (N, Cin, H, W), dtype=jnp.float32)
    weight = jax.random.normal(kw_, (Cout, Cin, ksize, ksize), dtype=jnp.float32) * 0.1
    gamma = 1.0 + 0.1 * jax.random.normal(kg, (Cout,), dtype=jnp.float32)
    beta = 0.1 * jax.random.normal(kb, (Cout,), dtype=jnp.float32)

    out = conv_bn_layer(x, weight, gamma, beta, stride=1, dilation=1)
    out = jax.block_until_ready(out)
    assert out.shape == (N, Cout, H, W)

    # Primary check: reference with the same bf16-rounded operands and f32
    # accumulation (exactly what the kernel computes) -> tight tolerance.
    x_r = x.astype(jnp.bfloat16).astype(jnp.float32)
    w_r = weight.astype(jnp.bfloat16).astype(jnp.float32)
    ref_bf = _reference(x_r, w_r, gamma, beta, stride=1, dilation=1)
    assert jnp.allclose(out, ref_bf, atol=1e-3, rtol=1e-3), \
        "mismatch vs bf16-operand reference"

    # Secondary sanity check vs full-f32 module semantics (only bf16 operand
    # rounding separates the two) -> loose tolerance.
    ref_f32 = _reference(x, weight, gamma, beta, stride=1, dilation=1)
    assert jnp.allclose(out, ref_f32, atol=5e-2, rtol=5e-2), \
        "mismatch vs f32 reference"

    print("KERNEL_OK")
</pallas_src>

<mosaic_0001>
module attributes {stable_mosaic.version = 11 : i64} {
  func.func @stats_kernel(%arg0: i32, %arg1: memref<9x8x4xbf16, #tpu.memory_space<vmem>>, %arg2: memref<8x1xf32, #tpu.memory_space<vmem>>, %arg3: memref<8x1xf32, #tpu.memory_space<vmem>>, %arg4: memref<1x288xf32, #tpu.memory_space<vmem>>, %arg5: memref<2x4x342xbf16, #tpu.memory_space<vmem>>, %arg6: memref<8x2xf32, #tpu.memory_space<vmem>>, %arg7: memref<8x1xf32, #tpu.memory_space<vmem>>, %arg8: memref<8x1xf32, #tpu.memory_space<vmem>>) attributes {dimension_semantics = [#tpu.dimension_semantics<arbitrary>], iteration_bounds = array<i64: 1>, scalar_prefetch = 0 : i64, scratch_operands = 2 : i64, tpu.core_type = #tpu.core_type<tc>, window_params = [{pipeline_mode = #tpu.pipeline_mode<synchronous>, transform_indices = @transform_0, window_bounds = array<i64: 9, 8, 4>}, {pipeline_mode = #tpu.pipeline_mode<synchronous>, transform_indices = @transform_1, window_bounds = array<i64: 8, 1>}, {pipeline_mode = #tpu.pipeline_mode<synchronous>, transform_indices = @transform_2, window_bounds = array<i64: 8, 1>}, {pipeline_mode = #tpu.pipeline_mode<synchronous>, transform_indices = @transform_3, window_bounds = array<i64: 1, 288>}, {transform_indices = @transform_4, window_bounds = array<i64: 2, 4, 342>}, {pipeline_mode = #tpu.pipeline_mode<synchronous>, transform_indices = @transform_5, window_bounds = array<i64: 8, 2>}]} {
    %c0_i32 = arith.constant 0 : i32
    %0 = arith.cmpi eq, %arg0, %c0_i32 : i32
    %1 = arith.extui %0 : i1 to i32
    %c0_i32_0 = arith.constant 0 : i32
    %2 = arith.cmpi ne, %1, %c0_i32_0 : i32
    scf.if %2 {
      %cst_137 = arith.constant 0.000000e+00 : f32
      %143 = vector.broadcast %cst_137 : f32 to vector<8x1xf32>
      %c0_138 = arith.constant 0 : index
      %c0_139 = arith.constant 0 : index
      %144 = vector.load %arg7[%c0_138, %c0_139] : memref<8x1xf32, #tpu.memory_space<vmem>>, vector<8x1xf32>
      tpu.vector_store %arg7[%c0_138, %c0_139], %143 {strides = array<i32>} : memref<8x1xf32, #tpu.memory_space<vmem>>, vector<8x1xf32>,
      %cst_140 = arith.constant 0.000000e+00 : f32
      %145 = vector.broadcast %cst_140 : f32 to vector<8x1xf32>
      %c0_141 = arith.constant 0 : index
      %c0_142 = arith.constant 0 : index
      %146 = vector.load %arg8[%c0_141, %c0_142] : memref<8x1xf32, #tpu.memory_space<vmem>>, vector<8x1xf32>
      tpu.vector_store %arg8[%c0_141, %c0_142], %145 {strides = array<i32>} : memref<8x1xf32, #tpu.memory_space<vmem>>, vector<8x1xf32>,
      %cst_143 = arith.constant 0.000000e+00 : f32
      %147 = vector.broadcast %cst_143 : f32 to vector<8x2xf32>
      %c0_144 = arith.constant 0 : index
      %c0_145 = arith.constant 0 : index
      %148 = vector.load %arg6[%c0_144, %c0_145] : memref<8x2xf32, #tpu.memory_space<vmem>>, vector<8x2xf32>
      tpu.vector_store %arg6[%c0_144, %c0_145], %147 {strides = array<i32>} : memref<8x2xf32, #tpu.memory_space<vmem>>, vector<8x2xf32>,
    } else {
    }
    %c0 = arith.constant 0 : index
    %c0_1 = arith.constant 0 : index
    %3 = vector.load %arg4[%c0, %c0_1] : memref<1x288xf32, #tpu.memory_space<vmem>>, vector<1x288xf32>
    %cst = arith.constant 0.000000e+00 : f32
    %4 = vector.broadcast %cst : f32 to vector<8x288xf32>
    %c0_2 = arith.constant 0 : index
    %c0_3 = arith.constant 0 : index
    %c0_4 = arith.constant 0 : index
    %5 = vector.load %arg5[%c0_2, %c0_3, %c0_4] : memref<2x4x342xbf16, #tpu.memory_space<vmem>>, vector<1x4x288xbf16>
    %6 = vector.shape_cast %5 : vector<1x4x288xbf16> to vector<4x288xbf16>
    %c0_5 = arith.constant 0 : index
    %c0_6 = arith.constant 0 : index
    %c0_7 = arith.constant 0 : index
    %7 = vector.load %arg1[%c0_5, %c0_6, %c0_7] : memref<9x8x4xbf16, #tpu.memory_space<vmem>>, vector<1x8x4xbf16>
    %8 = vector.shape_cast %7 : vector<1x8x4xbf16> to vector<8x4xbf16>
    %cst_8 = arith.constant dense<0.000000e+00> : vector<8x288xf32>
    %9 = tpu.matmul %8, %6, %cst_8 {dimension_numbers = #tpu.dot_dimension_numbers<[1], [0], [0], [1], [0, 0, 1, 1], [], []>} : vector<8x4xbf16>, vector<4x288xbf16>, vector<8x288xf32> -> vector<8x288xf32>
    %10 = arith.addf %4, %9 : vector<8x288xf32>
    %c0_9 = arith.constant 0 : index
    %c0_10 = arith.constant 0 : index
    %c1 = arith.constant 1 : index
    %11 = vector.load %arg5[%c0_9, %c0_10, %c1] : memref<2x4x342xbf16, #tpu.memory_space<vmem>>, vector<1x4x288xbf16>
    %12 = vector.shape_cast %11 : vector<1x4x288xbf16> to vector<4x288xbf16>
    %c1_11 = arith.constant 1 : index
    %c0_12 = arith.constant 0 : index
    %c0_13 = arith.constant 0 : index
    %13 = vector.load %arg1[%c1_11, %c0_12, %c0_13] : memref<9x8x4xbf16, #tpu.memory_space<vmem>>, vector<1x8x4xbf16>
    %14 = vector.shape_cast %13 : vector<1x8x4xbf16> to vector<8x4xbf16>
    %cst_14 = arith.constant dense<0.000000e+00> : vector<8x288xf32>
    %15 = tpu.matmul %14, %12, %cst_14 {dimension_numbers = #tpu.dot_dimension_numbers<[1], [0], [0], [1], [0, 0, 1, 1], [], []>} : vector<8x4xbf16>, vector<4x288xbf16>, vector<8x288xf32> -> vector<8x288xf32>
    %16 = arith.addf %10, %15 : vector<8x288xf32>
    %c0_15 = arith.constant 0 : index
    %c0_16 = arith.constant 0 : index
    %c2 = arith.constant 2 : index
    %17 = vector.load %arg5[%c0_15, %c0_16, %c2] : memref<2x4x342xbf16, #tpu.memory_space<vmem>>, vector<1x4x288xbf16>
    %18 = vector.shape_cast %17 : vector<1x4x288xbf16> to vector<4x288xbf16>
    %c2_17 = arith.constant 2 : index
    %c0_18 = arith.constant 0 : index
    %c0_19 = arith.constant 0 : index
    %19 = vector.load %arg1[%c2_17, %c0_18, %c0_19] : memref<9x8x4xbf16, #tpu.memory_space<vmem>>, vector<1x8x4xbf16>
    %20 = vector.shape_cast %19 : vector<1x8x4xbf16> to vector<8x4xbf16>
    %cst_20 = arith.constant dense<0.000000e+00> : vector<8x288xf32>
    %21 = tpu.matmul %20, %18, %cst_20 {dimension_numbers = #tpu.dot_dimension_numbers<[1], [0], [0], [1], [0, 0, 1, 1], [], []>} : vector<8x4xbf16>, vector<4x288xbf16>, vector<8x288xf32> -> vector<8x288xf32>
    %22 = arith.addf %16, %21 : vector<8x288xf32>
    %c0_21 = arith.constant 0 : index
    %c0_22 = arith.constant 0 : index
    %c18 = arith.constant 18 : index
    %23 = vector.load %arg5[%c0_21, %c0_22, %c18] : memref<2x4x342xbf16, #tpu.memory_space<vmem>>, vector<1x4x288xbf16>
    %24 = vector.shape_cast %23 : vector<1x4x288xbf16> to vector<4x288xbf16>
    %c3 = arith.constant 3 : index
    %c0_23 = arith.constant 0 : index
    %c0_24 = arith.constant 0 : index
    %25 = vector.load %arg1[%c3, %c0_23, %c0_24] : memref<9x8x4xbf16, #tpu.memory_space<vmem>>, vector<1x8x4xbf16>
    %26 = vector.shape_cast %25 : vector<1x8x4xbf16> to vector<8x4xbf16>
    %cst_25 = arith.constant dense<0.000000e+00> : vector<8x288xf32>
    %27 = tpu.matmul %26, %24, %cst_25 {dimension_numbers = #tpu.dot_dimension_numbers<[1], [0], [0], [1], [0, 0, 1, 1], [], []>} : vector<8x4xbf16>, vector<4x288xbf16>, vector<8x288xf32> -> vector<8x288xf32>
    %28 = arith.addf %22, %27 : vector<8x288xf32>
    %c0_26 = arith.constant 0 : index
    %c0_27 = arith.constant 0 : index
    %c19 = arith.constant 19 : index
    %29 = vector.load %arg5[%c0_26, %c0_27, %c19] : memref<2x4x342xbf16, #tpu.memory_space<vmem>>, vector<1x4x288xbf16>
    %30 = vector.shape_cast %29 : vector<1x4x288xbf16> to vector<4x288xbf16>
    %c4 = arith.constant 4 : index
    %c0_28 = arith.constant 0 : index
    %c0_29 = arith.constant 0 : index
    %31 = vector.load %arg1[%c4, %c0_28, %c0_29] : memref<9x8x4xbf16, #tpu.memory_space<vmem>>, vector<1x8x4xbf16>
    %32 = vector.shape_cast %31 : vector<1x8x4xbf16> to vector<8x4xbf16>
    %cst_30 = arith.constant dense<0.000000e+00> : vector<8x288xf32>
    %33 = tpu.matmul %32, %30, %cst_30 {dimension_numbers = #tpu.dot_dimension_numbers<[1], [0], [0], [1], [0, 0, 1, 1], [], []>} : vector<8x4xbf16>, vector<4x288xbf16>, vector<8x288xf32> -> vector<8x288xf32>
    %34 = arith.addf %28, %33 : vector<8x288xf32>
    %c0_31 = arith.constant 0 : index
    %c0_32 = arith.constant 0 : index
    %c20 = arith.constant 20 : index
    %35 = vector.load %arg5[%c0_31, %c0_32, %c20] : memref<2x4x342xbf16, #tpu.memory_space<vmem>>, vector<1x4x288xbf16>
    %36 = vector.shape_cast %35 : vector<1x4x288xbf16> to vector<4x288xbf16>
    %c5 = arith.constant 5 : index
    %c0_33 = arith.constant 0 : index
    %c0_34 = arith.constant 0 : index
    %37 = vector.load %arg1[%c5, %c0_33, %c0_34] : memref<9x8x4xbf16, #tpu.memory_space<vmem>>, vector<1x8x4xbf16>
    %38 = vector.shape_cast %37 : vector<1x8x4xbf16> to vector<8x4xbf16>
    %cst_35 = arith.constant dense<0.000000e+00> : vector<8x288xf32>
    %39 = tpu.matmul %38, %36, %cst_35 {dimension_numbers = #tpu.dot_dimension_numbers<[1], [0], [0], [1], [0, 0, 1, 1], [], []>} : vector<8x4xbf16>, vector<4x288xbf16>, vector<8x288xf32> -> vector<8x288xf32>
    %40 = arith.addf %34, %39 : vector<8x288xf32>
    %c0_36 = arith.constant 0 : index
    %c0_37 = arith.constant 0 : index
    %c36 = arith.constant 36 : index
    %41 = vector.load %arg5[%c0_36, %c0_37, %c36] : memref<2x4x342xbf16, #tpu.memory_space<vmem>>, vector<1x4x288xbf16>
    %42 = vector.shape_cast %41 : vector<1x4x288xbf16> to vector<4x288xbf16>
    %c6 = arith.constant 6 : index
    %c0_38 = arith.constant 0 : index
    %c0_39 = arith.constant 0 : index
    %43 = vector.load %arg1[%c6, %c0_38, %c0_39] : memref<9x8x4xbf16, #tpu.memory_space<vmem>>, vector<1x8x4xbf16>
    %44 = vector.shape_cast %43 : vector<1x8x4xbf16> to vector<8x4xbf16>
    %cst_40 = arith.constant dense<0.000000e+00> : vector<8x288xf32>
    %45 = tpu.matmul %44, %42, %cst_40 {dimension_numbers = #tpu.dot_dimension_numbers<[1], [0], [0], [1], [0, 0, 1, 1], [], []>} : vector<8x4xbf16>, vector<4x288xbf16>, vector<8x288xf32> -> vector<8x288xf32>
    %46 = arith.addf %40, %45 : vector<8x288xf32>
    %c0_41 = arith.constant 0 : index
    %c0_42 = arith.constant 0 : index
    %c37 = arith.constant 37 : index
    %47 = vector.load %arg5[%c0_41, %c0_42, %c37] : memref<2x4x342xbf16, #tpu.memory_space<vmem>>, vector<1x4x288xbf16>
    %48 = vector.shape_cast %47 : vector<1x4x288xbf16> to vector<4x288xbf16>
    %c7 = arith.constant 7 : index
    %c0_43 = arith.constant 0 : index
    %c0_44 = arith.constant 0 : index
    %49 = vector.load %arg1[%c7, %c0_43, %c0_44] : memref<9x8x4xbf16, #tpu.memory_space<vmem>>, vector<1x8x4xbf16>
    %50 = vector.shape_cast %49 : vector<1x8x4xbf16> to vector<8x4xbf16>
    %cst_45 = arith.constant dense<0.000000e+00> : vector<8x288xf32>
    %51 = tpu.matmul %50, %48, %cst_45 {dimension_numbers = #tpu.dot_dimension_numbers<[1], [0], [0], [1], [0, 0, 1, 1], [], []>} : vector<8x4xbf16>, vector<4x288xbf16>, vector<8x288xf32> -> vector<8x288xf32>
    %52 = arith.addf %46, %51 : vector<8x288xf32>
    %c0_46 = arith.constant 0 : index
    %c0_47 = arith.constant 0 : index
    %c38 = arith.constant 38 : index
    %53 = vector.load %arg5[%c0_46, %c0_47, %c38] : memref<2x4x342xbf16, #tpu.memory_space<vmem>>, vector<1x4x288xbf16>
    %54 = vector.shape_cast %53 : vector<1x4x288xbf16> to vector<4x288xbf16>
    %c8 = arith.constant 8 : index
    %c0_48 = arith.constant 0 : index
    %c0_49 = arith.constant 0 : index
    %55 = vector.load %arg1[%c8, %c0_48, %c0_49] : memref<9x8x4xbf16, #tpu.memory_space<vmem>>, vector<1x8x4xbf16>
    %56 = vector.shape_cast %55 : vector<1x8x4xbf16> to vector<8x4xbf16>
    %cst_50 = arith.constant dense<0.000000e+00> : vector<8x288xf32>
    %57 = tpu.matmul %56, %54, %cst_50 {dimension_numbers = #tpu.dot_dimension_numbers<[1], [0], [0], [1], [0, 0, 1, 1], [], []>} : vector<8x4xbf16>, vector<4x288xbf16>, vector<8x288xf32> -> vector<8x288xf32>
    %58 = arith.addf %52, %57 : vector<8x288xf32>
    %59 = vector.broadcast %3 : vector<1x288xf32> to vector<8x288xf32>
    %60 = arith.mulf %58, %59 : vector<8x288xf32>
    %c0_51 = arith.constant 0 : index
    %c0_52 = arith.constant 0 : index
    %61 = vector.load %arg7[%c0_51, %c0_52] : memref<8x1xf32, #tpu.memory_space<vmem>>, vector<8x1xf32>
    %cst_53 = arith.constant dense<0.000000e+00> : vector<8xf32>
    %62 = vector.multi_reduction <add>, %60, %cst_53 [1] : vector<8x288xf32> to vector<8xf32>
    %63 = vector.shape_cast %62 : vector<8xf32> to vector<8x1xf32>
    %64 = arith.addf %61, %63 : vector<8x1xf32>
    %c0_54 = arith.constant 0 : index
    %c0_55 = arith.constant 0 : index
    %65 = vector.load %arg7[%c0_54, %c0_55] : memref<8x1xf32, #tpu.memory_space<vmem>>, vector<8x1xf32>
    tpu.vector_store %arg7[%c0_54, %c0_55], %64 {strides = array<i32>} : memref<8x1xf32, #tpu.memory_space<vmem>>, vector<8x1xf32>,
    %c0_56 = arith.constant 0 : index
    %c0_57 = arith.constant 0 : index
    %66 = vector.load %arg8[%c0_56, %c0_57] : memref<8x1xf32, #tpu.memory_space<vmem>>, vector<8x1xf32>
    %67 = arith.mulf %60, %58 : vector<8x288xf32>
    %cst_58 = arith.constant dense<0.000000e+00> : vector<8xf32>
    %68 = vector.multi_reduction <add>, %67, %cst_58 [1] : vector<8x288xf32> to vector<8xf32>
    %69 = vector.shape_cast %68 : vector<8xf32> to vector<8x1xf32>
    %70 = arith.addf %66, %69 : vector<8x1xf32>
    %c0_59 = arith.constant 0 : index
    %c0_60 = arith.constant 0 : index
    %71 = vector.load %arg8[%c0_59, %c0_60] : memref<8x1xf32, #tpu.memory_space<vmem>>, vector<8x1xf32>
    tpu.vector_store %arg8[%c0_59, %c0_60], %70 {strides = array<i32>} : memref<8x1xf32, #tpu.memory_space<vmem>>, vector<8x1xf32>,
    %cst_61 = arith.constant 0.000000e+00 : f32
    %72 = vector.broadcast %cst_61 : f32 to vector<8x288xf32>
    %c1_62 = arith.constant 1 : index
    %c0_63 = arith.constant 0 : index
    %c0_64 = arith.constant 0 : index
    %73 = vector.load %arg5[%c1_62, %c0_63, %c0_64] : memref<2x4x342xbf16, #tpu.memory_space<vmem>>, vector<1x4x288xbf16>
    %74 = vector.shape_cast %73 : vector<1x4x288xbf16> to vector<4x288xbf16>
    %c0_65 = arith.constant 0 : index
    %c0_66 = arith.constant 0 : index
    %c0_67 = arith.constant 0 : index
    %75 = vector.load %arg1[%c0_65, %c0_66, %c0_67] : memref<9x8x4xbf16, #tpu.memory_space<vmem>>, vector<1x8x4xbf16>
    %76 = vector.shape_cast %75 : vector<1x8x4xbf16> to vector<8x4xbf16>
    %cst_68 = arith.constant dense<0.000000e+00> : vector<8x288xf32>
    %77 = tpu.matmul %76, %74, %cst_68 {dimension_numbers = #tpu.dot_dimension_numbers<[1], [0], [0], [1], [0, 0, 1, 1], [], []>} : vector<8x4xbf16>, vector<4x288xbf16>, vector<8x288xf32> -> vector<8x288xf32>
    %78 = arith.addf %72, %77 : vector<8x288xf32>
    %c1_69 = arith.constant 1 : index
    %c0_70 = arith.constant 0 : index
    %c1_71 = arith.constant 1 : index
    %79 = vector.load %arg5[%c1_69, %c0_70, %c1_71] : memref<2x4x342xbf16, #tpu.memory_space<vmem>>, vector<1x4x288xbf16>
    %80 = vector.shape_cast %79 : vector<1x4x288xbf16> to vector<4x288xbf16>
    %c1_72 = arith.constant 1 : index
    %c0_73 = arith.constant 0 : index
    %c0_74 = arith.constant 0 : index
    %81 = vector.load %arg1[%c1_72, %c0_73, %c0_74] : memref<9x8x4xbf16, #tpu.memory_space<vmem>>, vector<1x8x4xbf16>
    %82 = vector.shape_cast %81 : vector<1x8x4xbf16> to vector<8x4xbf16>
    %cst_75 = arith.constant dense<0.000000e+00> : vector<8x288xf32>
    %83 = tpu.matmul %82, %80, %cst_75 {dimension_numbers = #tpu.dot_dimension_numbers<[1], [0], [0], [1], [0, 0, 1, 1], [], []>} : vector<8x4xbf16>, vector<4x288xbf16>, vector<8x288xf32> -> vector<8x288xf32>
    %84 = arith.addf %78, %83 : vector<8x288xf32>
    %c1_76 = arith.constant 1 : index
    %c0_77 = arith.constant 0 : index
    %c2_78 = arith.constant 2 : index
    %85 = vector.load %arg5[%c1_76, %c0_77, %c2_78] : memref<2x4x342xbf16, #tpu.memory_space<vmem>>, vector<1x4x288xbf16>
    %86 = vector.shape_cast %85 : vector<1x4x288xbf16> to vector<4x288xbf16>
    %c2_79 = arith.constant 2 : index
    %c0_80 = arith.constant 0 : index
    %c0_81 = arith.constant 0 : index
    %87 = vector.load %arg1[%c2_79, %c0_80, %c0_81] : memref<9x8x4xbf16, #tpu.memory_space<vmem>>, vector<1x8x4xbf16>
    %88 = vector.shape_cast %87 : vector<1x8x4xbf16> to vector<8x4xbf16>
    %cst_82 = arith.constant dense<0.000000e+00> : vector<8x288xf32>
    %89 = tpu.matmul %88, %86, %cst_82 {dimension_numbers = #tpu.dot_dimension_numbers<[1], [0], [0], [1], [0, 0, 1, 1], [], []>} : vector<8x4xbf16>, vector<4x288xbf16>, vector<8x288xf32> -> vector<8x288xf32>
    %90 = arith.addf %84, %89 : vector<8x288xf32>
    %c1_83 = arith.constant 1 : index
    %c0_84 = arith.constant 0 : index
    %c18_85 = arith.constant 18 : index
    %91 = vector.load %arg5[%c1_83, %c0_84, %c18_85] : memref<2x4x342xbf16, #tpu.memory_space<vmem>>, vector<1x4x288xbf16>
    %92 = vector.shape_cast %91 : vector<1x4x288xbf16> to vector<4x288xbf16>
    %c3_86 = arith.constant 3 : index
    %c0_87 = arith.constant 0 : index
    %c0_88 = arith.constant 0 : index
    %93 = vector.load %arg1[%c3_86, %c0_87, %c0_88] : memref<9x8x4xbf16, #tpu.memory_space<vmem>>, vector<1x8x4xbf16>
    %94 = vector.shape_cast %93 : vector<1x8x4xbf16> to vector<8x4xbf16>
    %cst_89 = arith.constant dense<0.000000e+00> : vector<8x288xf32>
    %95 = tpu.matmul %94, %92, %cst_89 {dimension_numbers = #tpu.dot_dimension_numbers<[1], [0], [0], [1], [0, 0, 1, 1], [], []>} : vector<8x4xbf16>, vector<4x288xbf16>, vector<8x288xf32> -> vector<8x288xf32>
    %96 = arith.addf %90, %95 : vector<8x288xf32>
    %c1_90 = arith.constant 1 : index
    %c0_91 = arith.constant 0 : index
    %c19_92 = arith.constant 19 : index
    %97 = vector.load %arg5[%c1_90, %c0_91, %c19_92] : memref<2x4x342xbf16, #tpu.memory_space<vmem>>, vector<1x4x288xbf16>
    %98 = vector.shape_cast %97 : vector<1x4x288xbf16> to vector<4x288xbf16>
    %c4_93 = arith.constant 4 : index
    %c0_94 = arith.constant 0 : index
    %c0_95 = arith.constant 0 : index
    %99 = vector.load %arg1[%c4_93, %c0_94, %c0_95] : memref<9x8x4xbf16, #tpu.memory_space<vmem>>, vector<1x8x4xbf16>
    %100 = vector.shape_cast %99 : vector<1x8x4xbf16> to vector<8x4xbf16>
    %cst_96 = arith.constant dense<0.000000e+00> : vector<8x288xf32>
    %101 = tpu.matmul %100, %98, %cst_96 {dimension_numbers = #tpu.dot_dimension_numbers<[1], [0], [0], [1], [0, 0, 1, 1], [], []>} : vector<8x4xbf16>, vector<4x288xbf16>, vector<8x288xf32> -> vector<8x288xf32>
    %102 = arith.addf %96, %101 : vector<8x288xf32>
    %c1_97 = arith.constant 1 : index
    %c0_98 = arith.constant 0 : index
    %c20_99 = arith.constant 20 : index
    %103 = vector.load %arg5[%c1_97, %c0_98, %c20_99] : memref<2x4x342xbf16, #tpu.memory_space<vmem>>, vector<1x4x288xbf16>
    %104 = vector.shape_cast %103 : vector<1x4x288xbf16> to vector<4x288xbf16>
    %c5_100 = arith.constant 5 : index
    %c0_101 = arith.constant 0 : index
    %c0_102 = arith.constant 0 : index
    %105 = vector.load %arg1[%c5_100, %c0_101, %c0_102] : memref<9x8x4xbf16, #tpu.memory_space<vmem>>, vector<1x8x4xbf16>
    %106 = vector.shape_cast %105 : vector<1x8x4xbf16> to vector<8x4xbf16>
    %cst_103 = arith.constant dense<0.000000e+00> : vector<8x288xf32>
    %107 = tpu.matmul %106, %104, %cst_103 {dimension_numbers = #tpu.dot_dimension_numbers<[1], [0], [0], [1], [0, 0, 1, 1], [], []>} : vector<8x4xbf16>, vector<4x288xbf16>, vector<8x288xf32> -> vector<8x288xf32>
    %108 = arith.addf %102, %107 : vector<8x288xf32>
    %c1_104 = arith.constant 1 : index
    %c0_105 = arith.constant 0 : index
    %c36_106 = arith.constant 36 : index
    %109 = vector.load %arg5[%c1_104, %c0_105, %c36_106] : memref<2x4x342xbf16, #tpu.memory_space<vmem>>, vector<1x4x288xbf16>
    %110 = vector.shape_cast %109 : vector<1x4x288xbf16> to vector<4x288xbf16>
    %c6_107 = arith.constant 6 : index
    %c0_108 = arith.constant 0 : index
    %c0_109 = arith.constant 0 : index
    %111 = vector.load %arg1[%c6_107, %c0_108, %c0_109] : memref<9x8x4xbf16, #tpu.memory_space<vmem>>, vector<1x8x4xbf16>
    %112 = vector.shape_cast %111 : vector<1x8x4xbf16> to vector<8x4xbf16>
    %cst_110 = arith.constant dense<0.000000e+00> : vector<8x288xf32>
    %113 = tpu.matmul %112, %110, %cst_110 {dimension_numbers = #tpu.dot_dimension_numbers<[1], [0], [0], [1], [0, 0, 1, 1], [], []>} : vector<8x4xbf16>, vector<4x288xbf16>, vector<8x288xf32> -> vector<8x288xf32>
    %114 = arith.addf %108, %113 : vector<8x288xf32>
    %c1_111 = arith.constant 1 : index
    %c0_112 = arith.constant 0 : index
    %c37_113 = arith.constant 37 : index
    %115 = vector.load %arg5[%c1_111, %c0_112, %c37_113] : memref<2x4x342xbf16, #tpu.memory_space<vmem>>, vector<1x4x288xbf16>
    %116 = vector.shape_cast %115 : vector<1x4x288xbf16> to vector<4x288xbf16>
    %c7_114 = arith.constant 7 : index
    %c0_115 = arith.constant 0 : index
    %c0_116 = arith.constant 0 : index
    %117 = vector.load %arg1[%c7_114, %c0_115, %c0_116] : memref<9x8x4xbf16, #tpu.memory_space<vmem>>, vector<1x8x4xbf16>
    %118 = vector.shape_cast %117 : vector<1x8x4xbf16> to vector<8x4xbf16>
    %cst_117 = arith.constant dense<0.000000e+00> : vector<8x288xf32>
    %119 = tpu.matmul %118, %116, %cst_117 {dimension_numbers = #tpu.dot_dimension_numbers<[1], [0], [0], [1], [0, 0, 1, 1], [], []>} : vector<8x4xbf16>, vector<4x288xbf16>, vector<8x288xf32> -> vector<8x288xf32>
    %120 = arith.addf %114, %119 : vector<8x288xf32>
    %c1_118 = arith.constant 1 : index
    %c0_119 = arith.constant 0 : index
    %c38_120 = arith.constant 38 : index
    %121 = vector.load %arg5[%c1_118, %c0_119, %c38_120] : memref<2x4x342xbf16, #tpu.memory_space<vmem>>, vector<1x4x288xbf16>
    %122 = vector.shape_cast %121 : vector<1x4x288xbf16> to vector<4x288xbf16>
    %c8_121 = arith.constant 8 : index
    %c0_122 = arith.constant 0 : index
    %c0_123 = arith.constant 0 : index
    %123 = vector.load %arg1[%c8_121, %c0_122, %c0_123] : memref<9x8x4xbf16, #tpu.memory_space<vmem>>, vector<1x8x4xbf16>
    %124 = vector.shape_cast %123 : vector<1x8x4xbf16> to vector<8x4xbf16>
    %cst_124 = arith.constant dense<0.000000e+00> : vector<8x288xf32>
    %125 = tpu.matmul %124, %122, %cst_124 {dimension_numbers = #tpu.dot_dimension_numbers<[1], [0], [0], [1], [0, 0, 1, 1], [], []>} : vector<8x4xbf16>, vector<4x288xbf16>, vector<8x288xf32> -> vector<8x288xf32>
    %126 = arith.addf %120, %125 : vector<8x288xf32>
    %127 = vector.broadcast %3 : vector<1x288xf32> to vector<8x288xf32>
    %128 = arith.mulf %126, %127 : vector<8x288xf32>
    %c0_125 = arith.constant 0 : index
    %c0_126 = arith.constant 0 : index
    %129 = vector.load %arg7[%c0_125, %c0_126] : memref<8x1xf32, #tpu.memory_space<vmem>>, vector<8x1xf32>
    %cst_127 = arith.constant dense<0.000000e+00> : vector<8xf32>
    %130 = vector.multi_reduction <add>, %128, %cst_127 [1] : vector<8x288xf32> to vector<8xf32>
    %131 = vector.shape_cast %130 : vector<8xf32> to vector<8x1xf32>
    %132 = arith.addf %129, %131 : vector<8x1xf32>
    %c0_128 = arith.constant 0 : index
    %c0_129 = arith.constant 0 : index
    %133 = vector.load %arg7[%c0_128, %c0_129] : memref<8x1xf32, #tpu.memory_space<vmem>>, vector<8x1xf32>
    tpu.vector_store %arg7[%c0_128, %c0_129], %132 {strides = array<i32>} : memref<8x1xf32, #tpu.memory_space<vmem>>, vector<8x1xf32>,
    %c0_130 = arith.constant 0 : index
    %c0_131 = arith.constant 0 : index
    %134 = vector.load %arg8[%c0_130, %c0_131] : memref<8x1xf32, #tpu.memory_space<vmem>>, vector<8x1xf32>
    %135 = arith.mulf %128, %126 : vector<8x288xf32>
    %cst_132 = arith.constant dense<0.000000e+00> : vector<8xf32>
    %136 = vector.multi_reduction <add>, %135, %cst_132 [1] : vector<8x288xf32> to vector<8xf32>
    %137 = vector.shape_cast %136 : vector<8xf32> to vector<8x1xf32>
    %138 = arith.addf %134, %137 : vector<8x1xf32>
    %c0_133 = arith.constant 0 : index
    %c0_134 = arith.constant 0 : index
    %139 = vector.load %arg8[%c0_133, %c0_134] : memref<8x1xf32, #tpu.memory_space<vmem>>, vector<8x1xf32>
    tpu.vector_store %arg8[%c0_133, %c0_134], %138 {strides = array<i32>} : memref<8x1xf32, #tpu.memory_space<vmem>>, vector<8x1xf32>,
    %c0_i32_135 = arith.constant 0 : i32
    %140 = arith.cmpi eq, %arg0, %c0_i32_135 : i32
    %141 = arith.extui %140 : i1 to i32
    %c0_i32_136 = arith.constant 0 : i32
    %142 = arith.cmpi ne, %141, %c0_i32_136 : i32
    scf.if %142 {
      %c0_137 = arith.constant 0 : index
      %c0_138 = arith.constant 0 : index
      %143 = vector.load %arg7[%c0_137, %c0_138] : memref<8x1xf32, #tpu.memory_space<vmem>>, vector<8x1xf32>
      %cst_139 = arith.constant 0.001953125 : f32
      %144 = vector.broadcast %cst_139 : f32 to vector<8x1xf32>
      %145 = arith.mulf %143, %144 : vector<8x1xf32>
      %c0_140 = arith.constant 0 : index
      %c0_141 = arith.constant 0 : index
      %146 = vector.load %arg8[%c0_140, %c0_141] : memref<8x1xf32, #tpu.memory_space<vmem>>, vector<8x1xf32>
      %cst_142 = arith.constant 0.001953125 : f32
      %147 = vector.broadcast %cst_142 : f32 to vector<8x1xf32>
      %148 = arith.mulf %146, %147 : vector<8x1xf32>
      %149 = arith.mulf %145, %145 : vector<8x1xf32>
      %150 = arith.subf %148, %149 : vector<8x1xf32>
      %c0_143 = arith.constant 0 : index
      %c0_144 = arith.constant 0 : index
      %151 = vector.load %arg2[%c0_143, %c0_144] : memref<8x1xf32, #tpu.memory_space<vmem>>, vector<8x1xf32>
      %cst_145 = arith.constant 9.99999974E-6 : f32
      %152 = vector.broadcast %cst_145 : f32 to vector<8x1xf32>
      %153 = arith.addf %150, %152 : vector<8x1xf32>
      %154 = math.rsqrt %153 : vector<8x1xf32>
      %155 = arith.mulf %151, %154 : vector<8x1xf32>
      %c0_146 = arith.constant 0 : index
      %c0_147 = arith.constant 0 : index
      %156 = vector.load %arg3[%c0_146, %c0_147] : memref<8x1xf32, #tpu.memory_space<vmem>>, vector<8x1xf32>
      %157 = arith.mulf %145, %155 : vector<8x1xf32>
      %158 = arith.subf %156, %157 : vector<8x1xf32>
      %c0_148 = arith.constant 0 : index
      %c0_149 = arith.constant 0 : index
      %159 = vector.load %arg6[%c0_148, %c0_149] : memref<8x2xf32, #tpu.memory_space<vmem>>, vector<8x1xf32>
      tpu.vector_store %arg6[%c0_148, %c0_149], %155 {strides = array<i32>} : memref<8x2xf32, #tpu.memory_space<vmem>>, vector<8x1xf32>,
      %c0_150 = arith.constant 0 : index
      %c1_151 = arith.constant 1 : index
      %160 = vector.load %arg6[%c0_150, %c1_151] : memref<8x2xf32, #tpu.memory_space<vmem>>, vector<8x1xf32>
      tpu.vector_store %arg6[%c0_150, %c1_151], %158 {strides = array<i32>} : memref<8x2xf32, #tpu.memory_space<vmem>>, vector<8x1xf32>,
    } else {
    }
    return
  }
  func.func @transform_0(%arg0: i32) -> (i32, i32, i32) {
    %c0_i32 = arith.constant 0 : i32
    %c0_i32_0 = arith.constant 0 : i32
    %c0_i32_1 = arith.constant 0 : i32
    %c0_i32_2 = arith.constant 0 : i32
    return %c0_i32, %c0_i32_0, %c0_i32_1 : i32, i32, i32
  }
  func.func @transform_1(%arg0: i32) -> (i32, i32) {
    %c0_i32 = arith.constant 0 : i32
    %c0_i32_0 = arith.constant 0 : i32
    %c0_i32_1 = arith.constant 0 : i32
    return %c0_i32, %c0_i32_0 : i32, i32
  }
  func.func @transform_2(%arg0: i32) -> (i32, i32) {
    %c0_i32 = arith.constant 0 : i32
    %c0_i32_0 = arith.constant 0 : i32
    %c0_i32_1 = arith.constant 0 : i32
    return %c0_i32, %c0_i32_0 : i32, i32
  }
  func.func @transform_3(%arg0: i32) -> (i32, i32) {
    %c0_i32 = arith.constant 0 : i32
    %c0_i32_0 = arith.constant 0 : i32
    %c0_i32_1 = arith.constant 0 : i32
    return %c0_i32, %c0_i32_0 : i32, i32
  }
  func.func @transform_4(%arg0: i32) -> (i32, i32, i32) {
    %c0_i32 = arith.constant 0 : i32
    %c0_i32_0 = arith.constant 0 : i32
    %c0_i32_1 = arith.constant 0 : i32
    return %arg0, %c0_i32, %c0_i32_0 : i32, i32, i32
  }
  func.func @transform_5(%arg0: i32) -> (i32, i32) {
    %c0_i32 = arith.constant 0 : i32
    %c0_i32_0 = arith.constant 0 : i32
    %c0_i32_1 = arith.constant 0 : i32
    return %c0_i32, %c0_i32_0 : i32, i32
  }
}

</mosaic_0001>

<bundles_post_ra>
// kernel: tpu_custom_call.1
= control target key start
LH: loop header
LB: loop body
LE: loop exit
PB: predicated region body
PF: predicated region fallthrough
CT: control target
= control target key end

     0   :  { %v40_v0 = vlaneseq  ;;  %v2542_v2 = vmov 1983009808   ;;  %v2543_v4 = vmov 0.0   ;;  %s2544_s22 = smov 127   ;;  %vm2545_vm0 = vmmov 0   ;;  %s2546_s27 = smov 126   ;;  %s3084_s4 = inlined_call_operand.vmem [shape: bf16[2,4,342], index: 4, kind: input, shape index: {}]   ;;  %s3085_s0 = inlined_call_operand.vmem [shape: bf16[9,8,4], index: 0, kind: input, shape index: {}]   ;;  %s3086_s3 = inlined_call_operand.vmem [shape: f32[1,288], index: 3, kind: input, shape index: {}]   ;;  %s3087_s5 = inlined_call_operand.vmem [shape: f32[8,2], index: 5, kind: output, shape index: {}]   ;;  %s3088_s1 = inlined_call_operand.vmem [shape: f32[8,1], index: 1, kind: input, shape index: {}]   ;;  %s3089_s2 = inlined_call_operand.vmem [shape: f32[8,1], index: 2, kind: input, shape index: {}]  }
   0x1   :  { %v31_v1 = vld [vmem:[%s3084_s4] sm:$0x3f]  ;;  %v38_v3 = vunpack.c.l.s4 %v2542_v2  ;;  %2403 = vmatprep.subr.bf16.mxu1 %v2543_v4  ;;  %2405 = vmatprep.mubr.msk.bf16.mxu1 %vm2545_vm0, %v2543_v4  ;;  %v2342_v16 = vld [vmem:[%s3084_s4 + $0x6] sm:$0x3f]  ;;  %v2547_v36 = vmov 0   ;;  %s2548_s13 = smov 110  }
   0x2   :  { %v2589_v5 = vshrl.u32 %v40_v0, 7  ;;  %v36_v7 = vcombine.high %v31_v1, %v31_v1  ;;  %v249_v9 = vld [vmem:[%s3084_s4] sm:$0x3f]  ;;  %v2347_v19 = vld [vmem:[%s3084_s4 + $0x6] sm:$0x3f]  ;;  %v1628_v23 = vcombine.high %v2342_v16, %v2342_v16  ;;  %107 = vmatprep.mubr.bf16.mxu0 %v2547_v36  ;;  %s2549_s16 = smov 109  }
   0x3   :  { %v39_v6 = vunpack.c.0.s8 %v38_v3  ;;  %v253_v14 = vcombine.high %v249_v9, %v249_v9  ;;  %v374_v15 = vld [vmem:[%s3084_s4] sm:$0x3f]  ;;  %v2352_v20 = vld [vmem:[%s3084_s4 + $0x6] sm:$0x3f]  ;;  %v1751_v26 = vcombine.high %v2347_v19, %v2347_v19  ;;  %s2550_s19 = smov 108   ;;  %s2551_s23 = smov 92  }
   0x4   :  { %v378_v24 = vcombine.high %v374_v15, %v374_v15  ;;  %v2357_v28 = vld [vmem:[%s3084_s4 + $0x6] sm:$0x3f]  ;;  %v1874_v31 = vcombine.high %v2352_v20, %v2352_v20  ;;  %v499_v33 = vld [vmem:[%s3084_s4] sm:$0x3f]  ;;  %s2552_s26 = smov 91   ;;  %s2553_s30 = smov 90  }
   0x5   :  { %v2592_v8 = vsub.s32 %v39_v6, %v2589_v5  ;;  %v2362_v32 = vld [vmem:[%s3084_s4 + $0x6] sm:$0x3f]  ;;  %v503_v38 = vcombine.high %v499_v33, %v499_v33  ;;  %v1997_v39 = vcombine.high %v2357_v28, %v2357_v28  ;;  %v624_v46 = vld [vmem:[%s3084_s4] sm:$0x3f]  ;;  %vm65_vm1 = vcmask 1041408  }
   0x6   :  { %v2120_v43 = vcombine.high %v2362_v32, %v2362_v32  ;;  %v628_v51 = vcombine.high %v624_v46, %v624_v46  ;;  %v749_v52 = vld [vmem:[%s3084_s4] sm:$0x3f]  ;;  %v2324_v2 = vld [vmem:[%s3084_s4 + $0x6] sm:$0x3f]  ;;  %vm61_vm2 = vcmask 31744   ;;  %vm58_vm3 = vcmask 1039360  }
   0x7   :  { %v2598_v10 = vrot.slane %v31_v1, %v2592_v8  ;;  %v2601_v11 = vrot.slane %v36_v7, %v2592_v8  ;;  %v260_v13 = vrot.slane %v249_v9, %v2592_v8  ;;  %v267_v18 = vrot.slane %v253_v14, %v2592_v8  ;;  %v874_v56 = vld [vmem:[%s3084_s4] sm:$0x3f]  ;;  %v2332_v14 = vld [vmem:[%s3084_s4 + $0x6] sm:$0x3f] }
   0x8   :  { %v385_v21 = vrot.slane %v374_v15, %v2592_v8  ;;  %v2632_v22 = vrot.slane %v2342_v16, %v2592_v8  ;;  %v2635_v25 = vrot.slane %v2347_v19, %v2592_v8  ;;  %v2638_v27 = vrot.slane %v2352_v20, %v2592_v8  ;;  %v999_v62 = vld [vmem:[%s3084_s4] sm:$0x3f] }
   0x9   :  { %52 = vrot.lane.b32.xlu0 %v2598_v10, %s2544_s22  ;;  %56 = vrot.lane.b32.xlu1 %v2601_v11, %s2544_s22  ;;  %v2609_v12 = vcombine.high %v2598_v10, %v2598_v10  ;;  %v268_v17 = vcombine.high %v260_v13, %v260_v13  ;;  %v2646_v30 = vrot.slane %v1628_v23, %v2592_v8  ;;  %vm275_vm4 = vcmask 1031168  }
   0xa   :  { %v393_v29 = vcombine.high %v385_v21, %v385_v21  ;;  %v2655_v34 = vrot.slane %v1751_v26, %v2592_v8  ;;  %v2658_v35 = vrot.slane %v1874_v31, %v2592_v8  ;;  %v2662_v37 = vrot.slane %v2357_v28, %v2592_v8 }
   0xb   :  { %v2665_v40 = vrot.slane %v2362_v32, %v2592_v8  ;;  %v392_v41 = vrot.slane %v378_v24, %v2592_v8  ;;  %v510_v42 = vrot.slane %v499_v33, %v2592_v8  ;;  %v2672_v44 = vrot.slane %v1997_v39, %v2592_v8  ;;  %v2289_v32 = vld [vmem:[%s3085_s0 + $0x4] sm:$0xf] }
   0xc   :  { %v2675_v45 = vrot.slane %v2120_v43, %v2592_v8  ;;  %v517_v48 = vrot.slane %v503_v38, %v2592_v8  ;;  %v635_v49 = vrot.slane %v624_v46, %v2592_v8  ;;  %v642_v53 = vrot.slane %v628_v51, %v2592_v8  ;;  %v32_v43 = vld [vmem:[%s3085_s0] sm:$0xf] }
   0xd   :  { %54 = vrot.lane.b32.xlu0 %v2609_v12, %s2544_s22  ;;  %269 = vrot.lane.b32.xlu1 %v260_v13, %s2546_s27  ;;  %v518_v47 = vcombine.high %v510_v42, %v510_v42  ;;  %v760_v54 = vrot.slane %v749_v52, %v2592_v8  ;;  %v753_v55 = vcombine.high %v749_v52, %v749_v52  ;;  %v166_v33 = vsel %vm65_vm1, %v2601_v11, 0 }
   0xe   :  { %v643_v50 = vcombine.high %v635_v49, %v635_v49  ;;  %v885_v59 = vrot.slane %v874_v56, %v2592_v8  ;;  %v878_v61 = vcombine.high %v874_v56, %v874_v56  ;;  %v1010_v0 = vrot.slane %v999_v62, %v2592_v8 }
   0xf   :  { %v768_v57 = vcombine.high %v760_v54, %v760_v54  ;;  %v767_v58 = vrot.slane %v753_v55, %v2592_v8  ;;  %v1003_v1 = vcombine.high %v999_v62, %v999_v62  ;;  %v2716_v7 = vrot.slane %v2324_v2, %v2592_v8 }
  0x10   :  { %v893_v60 = vcombine.high %v885_v59, %v885_v59  ;;  %v892_v63 = vrot.slane %v878_v61, %v2592_v8  ;;  %v1018_v3 = vcombine.high %v1010_v0, %v1010_v0  ;;  %v1169_v13 = vcombine.high %v2324_v2, %v2324_v2  ;;  %v2304_v2 = vld [vmem:[%s3085_s0 + $0x10] sm:$0xf] }
  0x11   :  { %271 = vrot.lane.b32.xlu0 %v268_v17, %s2546_s27  ;;  %273 = vrot.lane.b32.xlu1 %v267_v18, %s2546_s27  ;;  %v1017_v6 = vrot.slane %v1003_v1, %v2592_v8  ;;  %v2722_v9 = vcombine.high %v2716_v7, %v2716_v7  ;;  %v1389_v16 = vrot.slane %v2332_v14, %v2592_v8  ;;  %v2337_v18 = vld [vmem:[%s3084_s4 + $0x6] sm:$0x3f]  ;;  %v160_v11 = vsel %vm65_vm1, %v2598_v10, 0 }
  0x12   :  { %v2732_v15 = vrot.slane %v1169_v13, %v2592_v8  ;;  %v1382_v17 = vcombine.high %v2332_v14, %v2332_v14  ;;  %v1505_v24 = vcombine.high %v2337_v18, %v2337_v18  ;;  %v1643_v28 = vcombine.high %v2632_v22, %v2632_v22 }
  0x13   :  { %v1397_v19 = vcombine.high %v1389_v16, %v1389_v16  ;;  %vm400_vm5 = vcmask 900096   ;;  %vm525_vm6 = vcmask 891904   ;;  %vm650_vm7 = vcmask 883712  }
  0x14   :  { %v1396_v20 = vrot.slane %v1382_v17, %v2592_v8  ;;  %v1519_v26 = vrot.slane %v1505_v24, %v2592_v8  ;;  %vm775_vm8 = vcmask 752640   ;;  %vm900_vm9 = vcmask 744448  }
  0x15   :  { %394 = vrot.lane.b32.xlu0 %v385_v21, %s2548_s13  ;;  %396 = vrot.lane.b32.xlu1 %v393_v29, %s2548_s13  ;;  %v1512_v21 = vrot.slane %v2337_v18, %v2592_v8  ;;  %v1766_v29 = vcombine.high %v2635_v25, %v2635_v25  ;;  %v1889_v8 = vcombine.high %v2638_v27, %v2638_v27  ;;  %vm1025_vm10 = vcmask 736256  }
  0x16   :  { %vm25_vm11 = vcmask 7168   ;;  %vm1145_vm12 = vcmask 261120   ;;  %vm28_vm13 = vcmask 15360   ;;  %vm2283_vm14 = vcmask 15368  }
  0x17   :  { %v1520_v23 = vcombine.high %v1512_v21, %v1512_v21  ;;  %26 = vst.msk [vmem:[#allocation2] sm:$0xff] %vm25_vm11, %v2543_v4  ;;  %27 = vst.msk [vmem:[#allocation3] sm:$0xff] %vm25_vm11, %v2543_v4 }
  0x18   :  { %29 = vst.msk [vmem:[%s3087_s5] sm:$0xff] %vm28_vm13, %v2543_v4 }
  0x19   :  { %398 = vrot.lane.b32.xlu0 %v392_v41, %s2548_s13  ;;  %519 = vrot.lane.b32.xlu1 %v510_v42, %s2549_s16 }
  0x1d   :  { %521 = vrot.lane.b32.xlu0 %v518_v47, %s2549_s16  ;;  %523 = vrot.lane.b32.xlu1 %v517_v48, %s2549_s16 }
  0x21   :  { %644 = vrot.lane.b32.xlu0 %v635_v49, %s2550_s19  ;;  %646 = vrot.lane.b32.xlu1 %v643_v50, %s2550_s19  ;;  %v2296_v50 = vld [vmem:[%s3085_s0 + $0x8] sm:$0xf] }
  0x25   :  { %648 = vrot.lane.b32.xlu0 %v642_v53, %s2550_s19  ;;  %769 = vrot.lane.b32.xlu1 %v760_v54, %s2551_s23 }
  0x29   :  { %771 = vrot.lane.b32.xlu0 %v768_v57, %s2551_s23  ;;  %773 = vrot.lane.b32.xlu1 %v767_v58, %s2551_s23  ;;  %v2300_v58 = vld [vmem:[%s3085_s0 + $0xc] sm:$0xf] }
  0x2d   :  { %894 = vrot.lane.b32.xlu0 %v885_v59, %s2552_s26  ;;  %896 = vrot.lane.b32.xlu1 %v893_v60, %s2552_s26 }
  0x31   :  { %898 = vrot.lane.b32.xlu0 %v892_v63, %s2552_s26  ;;  %1019 = vrot.lane.b32.xlu1 %v1010_v0, %s2553_s30 }
  0x35   :  { %1021 = vrot.lane.b32.xlu0 %v1018_v3, %s2553_s30  ;;  %1023 = vrot.lane.b32.xlu1 %v1017_v6, %s2553_s30 }
  0x39   :  { %1185 = vrot.lane.b32.xlu0 %v2716_v7, %s2544_s22  ;;  %1187 = vrot.lane.b32.xlu1 %v2722_v9, %s2544_s22 }
  0x3d   :  { %1189 = vrot.lane.b32.xlu0 %v2732_v15, %s2544_s22  ;;  %1398 = vrot.lane.b32.xlu1 %v1389_v16, %s2546_s27 }
  0x41   :  { %1400 = vrot.lane.b32.xlu0 %v1397_v19, %s2546_s27  ;;  %1402 = vrot.lane.b32.xlu1 %v1396_v20, %s2546_s27  ;;  %v2308_v19 = vld [vmem:[%s3085_s0 + $0x14] sm:$0xf] }
  0x45   :  { %1521 = vrot.lane.b32.xlu0 %v1512_v21, %s2548_s13  ;;  %1523 = vrot.lane.b32.xlu1 %v1520_v23, %s2548_s13 }
  0x49   :  { %1525 = vrot.lane.b32.xlu0 %v1519_v26, %s2548_s13  ;;  %1644 = vrot.lane.b32.xlu1 %v2632_v22, %s2549_s16  ;;  %v2012_v22 = vcombine.high %v2662_v37, %v2662_v37 }
  0x4d   :  { %1646 = vrot.lane.b32.xlu0 %v1643_v28, %s2549_s16  ;;  %1648 = vrot.lane.b32.xlu1 %v2646_v30, %s2549_s16 }
  0x51   :  { %1767 = vrot.lane.b32.xlu0 %v2635_v25, %s2550_s19  ;;  %1769 = vrot.lane.b32.xlu1 %v1766_v29, %s2550_s19  ;;  %v2135_v25 = vcombine.high %v2665_v40, %v2665_v40 }
  0x55   :  { %1771 = vrot.lane.b32.xlu0 %v2655_v34, %s2550_s19  ;;  %1890 = vrot.lane.b32.xlu1 %v2638_v27, %s2551_s23 }
  0x59   :  { %1892 = vrot.lane.b32.xlu0 %v1889_v8, %s2551_s23  ;;  %1894 = vrot.lane.b32.xlu1 %v2658_v35, %s2551_s23  ;;  %v2312_v8 = vld [vmem:[%s3085_s0 + $0x18] sm:$0xf] }
  0x5d   :  { %2013 = vrot.lane.b32.xlu0 %v2662_v37, %s2552_s26  ;;  %2015 = vrot.lane.b32.xlu1 %v2012_v22, %s2552_s26 }
  0x61   :  { %2017 = vrot.lane.b32.xlu0 %v2672_v44, %s2552_s26  ;;  %2136 = vrot.lane.b32.xlu1 %v2665_v40, %s2553_s30  ;;  %s2554_s26 = smov 1  }
  0x65   :  { %2138 = vrot.lane.b32.xlu0 %v2135_v25, %s2553_s30  ;;  %2140 = vrot.lane.b32.xlu1 %v2675_v45, %s2553_s30 }
  0x7b   :  { %v53_v27 = vpop.permute.xlu0 %52  ;;  %v57_v30 = vpop.permute.xlu1 %56 }
  0x7c   :  { %v73_v31 = vsel %vm65_vm1, %v57_v30, 0 }
  0x7d   :  { %2404 = vmatpush3.bf16.msra.mxu1 %v73_v31 }
  0x7e   :  { %2409 = vmatprep.subr.bf16.mxu1 %v2543_v4 }
  0x7f   :  { %v55_v34 = vpop.permute.xlu0 %54  ;;  %v270_v35 = vpop.permute.xlu1 %269 }
  0x80   :  { %2406 = vmatmul.mubr.msk.bf16.vlgmr.msra.gmra.mxu1 %vm61_vm2, %v2289_v32  ;;  %v60_v37 = vsel %vm58_vm3, %v55_v34, %v57_v30  ;;  %v59_v38 = vsel %vm58_vm3, %v53_v27, %v55_v34  ;;  %v2316_v34 = vld [vmem:[%s3085_s0 + $0x1c] sm:$0xf] }
  0x81   :  { %2290 = vmatprep.subr.msk.bf16.mxu0 %vm65_vm1, %v60_v37  ;;  %v67_v39 = vsel %vm65_vm1, %v59_v38, 0  ;;  %2410 = vmatpush3.bf16.msra.mxu1 %v166_v33 }
  0x82   :  { %90 = vmatpush1.bf16.msra.mxu0 %v67_v39  ;;  %2411 = vmatprep.mubr.msk.bf16.mxu1 %vm2545_vm0, %v2543_v4 }
  0x83   :  { %2293 = vmatprep.subr.msk.bf16.mxu0 %vm65_vm1, %v2609_v12  ;;  %v272_v40 = vpop.permute.xlu0 %271  ;;  %v274_v41 = vpop.permute.xlu1 %273  ;;  %2415 = vmatprep.subr.bf16.mxu1 %v2543_v4 }
  0x84   :  { %v277_v42 = vsel %vm275_vm4, %v272_v40, %v274_v41  ;;  %v288_v44 = vsel %vm65_vm1, %v274_v41, 0  ;;  %v276_v45 = vsel %vm275_vm4, %v270_v35, %v272_v40  ;;  %v2320_v41 = vld [vmem:[%s3085_s0 + $0x20] sm:$0xf] }
  0x85   :  { %2291 = vmatmul.mubr.msk.bf16.vlgmr.msra.gmra.mxu0 %vm61_vm2, %v2289_v32  ;;  %v282_v46 = vsel %vm65_vm1, %v276_v45, 0 }
  0x86   :  { %183 = vmatpush1.bf16.msra.mxu0 %v160_v11  ;;  %200 = vmatprep.mubr.bf16.mxu0 %v2547_v36 }
  0x87   :  { %2297 = vmatprep.subr.msk.bf16.mxu0 %vm65_vm1, %v277_v42  ;;  %v395_v10 = vpop.permute.xlu0 %394  ;;  %v397_v12 = vpop.permute.xlu1 %396 }
  0x88   :  { %2412 = vmatmul.mubr.msk.bf16.vlgmr.msra.gmra.mxu1 %vm61_vm2, %v32_v43  ;;  %v401_v53 = vsel %vm400_vm5, %v395_v10, %v397_v12 }
  0x89   :  { %2416 = vmatpush3.bf16.msra.mxu1 %v288_v44  ;;  %2417 = vmatprep.mubr.msk.bf16.mxu1 %vm2545_vm0, %v2543_v4  ;;  %v407_v55 = vsel %vm65_vm1, %v401_v53, 0 }
  0x8a   :  { %2421 = vmatprep.subr.bf16.mxu1 %v2543_v4 }
  0x8b   :  { %v399_v47 = vpop.permute.xlu0 %398  ;;  %v520_v48 = vpop.permute.xlu1 %519 }
  0x8c   :  { %v402_v49 = vsel %vm400_vm5, %v397_v12, %v399_v47  ;;  %v413_v51 = vsel %vm65_vm1, %v399_v47, 0  ;;  %v2325_v12 = vld [vmem:[%s3085_s0 + $0x4] sm:$0xf] }
  0x8d   :  { %2294 = vmatmul.mubr.msk.bf16.vlgmr.msra.gmra.mxu0 %vm61_vm2, %v32_v43 }
  0x8e   :  { %305 = vmatpush1.bf16.msra.mxu0 %v282_v46  ;;  %322 = vmatprep.mubr.bf16.mxu0 %v2547_v36  ;;  %v1296_v46 = vsel %vm65_vm1, %v2732_v15, 0 }
  0x8f   :  { %2301 = vmatprep.subr.msk.bf16.mxu0 %vm65_vm1, %v402_v49  ;;  %v522_v52 = vpop.permute.xlu0 %521  ;;  %v524_v54 = vpop.permute.xlu1 %523 }
  0x90   :  { %2418 = vmatmul.mubr.msk.bf16.vlgmr.msra.gmra.mxu1 %vm61_vm2, %v2296_v50  ;;  %v527_v57 = vsel %vm525_vm6, %v522_v52, %v524_v54  ;;  %v538_v60 = vsel %vm65_vm1, %v524_v54, 0  ;;  %v526_v61 = vsel %vm525_vm6, %v520_v48, %v522_v52  ;;  %v1290_v48 = vsel %vm65_vm1, %v2716_v7, 0 }
  0x91   :  { %2422 = vmatpush3.bf16.msra.mxu1 %v413_v51  ;;  %2423 = vmatprep.mubr.msk.bf16.mxu1 %vm2545_vm0, %v2543_v4  ;;  %v532_v63 = vsel %vm65_vm1, %v526_v61, 0 }
  0x92   :  { %2427 = vmatprep.subr.bf16.mxu1 %v2543_v4 }
  0x93   :  { %v645_v56 = vpop.permute.xlu0 %644  ;;  %v647_v59 = vpop.permute.xlu1 %646 }
  0x94   :  { %v651_v13 = vsel %vm650_vm7, %v645_v56, %v647_v59  ;;  %v2333_v56 = vld [vmem:[%s3085_s0 + $0x8] sm:$0xf] }
  0x95   :  { %2298 = vmatmul.mubr.msk.bf16.vlgmr.msra.gmra.mxu0 %vm61_vm2, %v2296_v50  ;;  %v657_v16 = vsel %vm65_vm1, %v651_v13, 0 }
  0x96   :  { %430 = vmatpush1.bf16.msra.mxu0 %v407_v55  ;;  %447 = vmatprep.mubr.bf16.mxu0 %v2547_v36 }
  0x97   :  { %2305 = vmatprep.subr.msk.bf16.mxu0 %vm65_vm1, %v527_v57  ;;  %v649_v62 = vpop.permute.xlu0 %648  ;;  %v770_v0 = vpop.permute.xlu1 %769 }
  0x98   :  { %2424 = vmatmul.mubr.msk.bf16.vlgmr.msra.gmra.mxu1 %vm61_vm2, %v2300_v58  ;;  %v652_v1 = vsel %vm650_vm7, %v647_v59, %v649_v62  ;;  %v663_v6 = vsel %vm65_vm1, %v649_v62, 0 }
  0x99   :  { %2428 = vmatpush3.bf16.msra.mxu1 %v538_v60  ;;  %2429 = vmatprep.mubr.msk.bf16.mxu1 %vm2545_vm0, %v2543_v4 }
  0x9a   :  { %2433 = vmatprep.subr.bf16.mxu1 %v2543_v4 }
  0x9b   :  { %v772_v3 = vpop.permute.xlu0 %771  ;;  %v774_v14 = vpop.permute.xlu1 %773 }
  0x9c   :  { %v777_v18 = vsel %vm775_vm8, %v772_v3, %v774_v14  ;;  %v788_v21 = vsel %vm65_vm1, %v774_v14, 0  ;;  %v776_v23 = vsel %vm775_vm8, %v770_v0, %v772_v3  ;;  %v2338_v0 = vld [vmem:[%s3085_s0 + $0xc] sm:$0xf] }
  0x9d   :  { %2302 = vmatmul.mubr.msk.bf16.vlgmr.msra.gmra.mxu0 %vm61_vm2, %v2300_v58  ;;  %v782_v26 = vsel %vm65_vm1, %v776_v23, 0 }
  0x9e   :  { %555 = vmatpush1.bf16.msra.mxu0 %v532_v63  ;;  %572 = vmatprep.mubr.bf16.mxu0 %v2547_v36 }
  0x9f   :  { %2309 = vmatprep.subr.msk.bf16.mxu0 %vm65_vm1, %v652_v1  ;;  %v895_v17 = vpop.permute.xlu0 %894  ;;  %v897_v20 = vpop.permute.xlu1 %896 }
  0xa0   :  { %2430 = vmatmul.mubr.msk.bf16.vlgmr.msra.gmra.mxu1 %vm61_vm2, %v2304_v2  ;;  %v901_v27 = vsel %vm900_vm9, %v895_v17, %v897_v20  ;;  %v2343_v17 = vld [vmem:[%s3085_s0 + $0x10] sm:$0xf] }
  0xa1   :  { %2434 = vmatpush3.bf16.msra.mxu1 %v663_v6  ;;  %2435 = vmatprep.mubr.msk.bf16.mxu1 %vm2545_vm0, %v2543_v4  ;;  %v907_v31 = vsel %vm65_vm1, %v901_v27, 0 }
  0xa2   :  { %2439 = vmatprep.subr.bf16.mxu1 %v2543_v4 }
  0xa3   :  { %v899_v24 = vpop.permute.xlu0 %898  ;;  %v1020_v28 = vpop.permute.xlu1 %1019 }
  0xa4   :  { %v902_v29 = vsel %vm900_vm9, %v897_v20, %v899_v24  ;;  %v913_v25 = vsel %vm65_vm1, %v899_v24, 0 }
  0xa5   :  { %2306 = vmatmul.mubr.msk.bf16.vlgmr.msra.gmra.mxu0 %vm61_vm2, %v2304_v2 }
  0xa6   :  { %680 = vmatpush1.bf16.msra.mxu0 %v657_v16  ;;  %697 = vmatprep.mubr.bf16.mxu0 %v2547_v36 }
  0xa7   :  { %2313 = vmatprep.subr.msk.bf16.mxu0 %vm65_vm1, %v777_v18  ;;  %v1022_v22 = vpop.permute.xlu0 %1021  ;;  %v1024_v30 = vpop.permute.xlu1 %1023 }
  0xa8   :  { %2436 = vmatmul.mubr.msk.bf16.vlgmr.msra.gmra.mxu1 %vm61_vm2, %v2308_v19  ;;  %v1027_v33 = vsel %vm1025_vm10, %v1022_v22, %v1024_v30  ;;  %v1038_v35 = vsel %vm65_vm1, %v1024_v30, 0  ;;  %v1026_v37 = vsel %vm1025_vm10, %v1020_v28, %v1022_v22  ;;  %v2348_v28 = vld [vmem:[%s3085_s0 + $0x14] sm:$0xf] }
  0xa9   :  { %2440 = vmatpush3.bf16.msra.mxu1 %v788_v21  ;;  %2441 = vmatprep.mubr.msk.bf16.mxu1 %vm2545_vm0, %v2543_v4  ;;  %v1032_v11 = vsel %vm65_vm1, %v1026_v37, 0 }
  0xaa   :  { %2445 = vmatprep.subr.bf16.mxu1 %v2543_v4 }
  0xab   :  { %v1186_v32 = vpop.permute.xlu0 %1185  ;;  %v1188_v38 = vpop.permute.xlu1 %1187 }
  0xac   :  { %v1191_v43 = vsel %vm58_vm3, %v1186_v32, %v1188_v38  ;;  %v2353_v32 = vld [vmem:[%s3085_s0 + $0x18] sm:$0xf] }
  0xad   :  { %2310 = vmatmul.mubr.msk.bf16.vlgmr.msra.gmra.mxu0 %vm61_vm2, %v2308_v19  ;;  %v1197_v44 = vsel %vm65_vm1, %v1191_v43, 0  ;;  %v2363_v43 = vld [vmem:[%s3085_s0 + $0x20] sm:$0xf] }
  0xae   :  { %805 = vmatpush1.bf16.msra.mxu0 %v782_v26  ;;  %822 = vmatprep.mubr.bf16.mxu0 %v2547_v36 }
  0xaf   :  { %2317 = vmatprep.subr.msk.bf16.mxu0 %vm65_vm1, %v902_v29  ;;  %v1190_v39 = vpop.permute.xlu0 %1189  ;;  %v1399_v10 = vpop.permute.xlu1 %1398 }
  0xb0   :  { %2442 = vmatmul.mubr.msk.bf16.vlgmr.msra.gmra.mxu1 %vm61_vm2, %v2312_v8  ;;  %v1192_v40 = vsel %vm58_vm3, %v1188_v38, %v1190_v39  ;;  %v1203_v42 = vsel %vm65_vm1, %v1190_v39, 0 }
  0xb1   :  { %2446 = vmatpush3.bf16.msra.mxu1 %v913_v25  ;;  %2447 = vmatprep.mubr.msk.bf16.mxu1 %vm2545_vm0, %v2543_v4 }
  0xb2   :  { %2451 = vmatprep.subr.bf16.mxu1 %v2543_v4 }
  0xb3   :  { %v1401_v45 = vpop.permute.xlu0 %1400  ;;  %v1403_v47 = vpop.permute.xlu1 %1402 }
  0xb4   :  { %v1405_v50 = vsel %vm275_vm4, %v1401_v45, %v1403_v47  ;;  %v1416_v51 = vsel %vm65_vm1, %v1403_v47, 0  ;;  %v1404_v52 = vsel %vm275_vm4, %v1399_v10, %v1401_v45 }
  0xb5   :  { %2314 = vmatmul.mubr.msk.bf16.vlgmr.msra.gmra.mxu0 %vm61_vm2, %v2312_v8  ;;  %v1410_v53 = vsel %vm65_vm1, %v1404_v52, 0 }
  0xb6   :  { %930 = vmatpush1.bf16.msra.mxu0 %v907_v31  ;;  %947 = vmatprep.mubr.bf16.mxu0 %v2547_v36 }
  0xb7   :  { %2321 = vmatprep.subr.msk.bf16.mxu0 %vm65_vm1, %v1027_v33  ;;  %v1522_v49 = vpop.permute.xlu0 %1521  ;;  %v1524_v15 = vpop.permute.xlu1 %1523 }
  0xb8   :  { %2448 = vmatmul.mubr.msk.bf16.vlgmr.msra.gmra.mxu1 %vm61_vm2, %v2316_v34  ;;  %v1527_v59 = vsel %vm400_vm5, %v1522_v49, %v1524_v15 }
  0xb9   :  { %2452 = vmatpush3.bf16.msra.mxu1 %v1038_v35  ;;  %2453 = vmatprep.mubr.msk.bf16.mxu1 %vm2545_vm0, %v2543_v4  ;;  %v1533_v61 = vsel %vm65_vm1, %v1527_v59, 0 }
  0xba   :  { %2457 = vmatprep.subr.bf16.mxu1 %v2543_v4 }
  0xbb   :  { %v1526_v7 = vpop.permute.xlu0 %1525  ;;  %v1645_v54 = vpop.permute.xlu1 %1644 }
  0xbc   :  { %v1528_v55 = vsel %vm400_vm5, %v1524_v15, %v1526_v7  ;;  %v1539_v58 = vsel %vm65_vm1, %v1526_v7, 0 }
  0xbd   :  { %2318 = vmatmul.mubr.msk.bf16.vlgmr.msra.gmra.mxu0 %vm61_vm2, %v2316_v34 }
  0xbe   :  { %1055 = vmatpush1.bf16.msra.mxu0 %v1032_v11  ;;  %1072 = vmatprep.mubr.bf16.mxu0 %v2547_v36  ;;  %v2358_v11 = vld [vmem:[%s3085_s0 + $0x1c] sm:$0xf] }
  0xbf   :  { %2326 = vmatprep.subr.msk.bf16.mxu0 %vm65_vm1, %v1192_v40  ;;  %v1647_v57 = vpop.permute.xlu0 %1646  ;;  %v1649_v60 = vpop.permute.xlu1 %1648 }
  0xc0   :  { %2454 = vmatmul.mubr.msk.bf16.vlgmr.msra.gmra.mxu1 %vm61_vm2, %v2320_v41  ;;  %v1651_v63 = vsel %vm525_vm6, %v1647_v57, %v1649_v60  ;;  %v1662_v2 = vsel %vm65_vm1, %v1649_v60, 0  ;;  %v1650_v3 = vsel %vm525_vm6, %v1645_v54, %v1647_v57 }
  0xc1   :  { %2458 = vmatpush3.bf16.msra.mxu1 %v1203_v42  ;;  %2459 = vmatprep.mubr.msk.bf16.mxu1 %vm2545_vm0, %v2543_v4  ;;  %v1656_v13 = vsel %vm65_vm1, %v1650_v3, 0 }
  0xc2   :  { %2463 = vmatprep.subr.bf16.mxu1 %v2543_v4 }
  0xc3   :  { %v1768_v62 = vpop.permute.xlu0 %1767  ;;  %v1770_v1 = vpop.permute.xlu1 %1769 }
  0xc4   :  { %v1773_v20 = vsel %vm650_vm7, %v1768_v62, %v1770_v1 }
  0xc5   :  { %2322 = vmatmul.mubr.msk.bf16.vlgmr.msra.gmra.mxu0 %vm61_vm2, %v2320_v41  ;;  %v1779_v23 = vsel %vm65_vm1, %v1773_v20, 0 }
  0xc6   :  { %1220 = vmatpush1.bf16.msra.mxu0 %v1197_v44  ;;  %1237 = vmatprep.mubr.bf16.mxu0 %v2547_v36 }
  0xc7   :  { %2329 = vmatprep.subr.msk.bf16.mxu0 %vm65_vm1, %v2722_v9  ;;  %v1166_v9 = vld [vmem:[%s3085_s0] sm:$0xf]  ;;  %v1772_v6 = vpop.permute.xlu0 %1771  ;;  %v1891_v14 = vpop.permute.xlu1 %1890 }
  0xc8   :  { %2460 = vmatmul.mubr.msk.bf16.vlgmr.msra.gmra.mxu1 %vm61_vm2, %v2325_v12  ;;  %v1774_v16 = vsel %vm650_vm7, %v1770_v1, %v1772_v6  ;;  %v1785_v19 = vsel %vm65_vm1, %v1772_v6, 0 }
  0xc9   :  { %2464 = vmatpush3.bf16.msra.mxu1 %v1296_v46  ;;  %2465 = vmatprep.mubr.msk.bf16.mxu1 %vm2545_vm0, %v2543_v4 }
  0xca   :  { %2469 = vmatprep.subr.bf16.mxu1 %v2543_v4 }
  0xcb   :  { %v1893_v18 = vpop.permute.xlu0 %1892  ;;  %v1895_v21 = vpop.permute.xlu1 %1894 }
  0xcc   :  { %v1897_v26 = vsel %vm775_vm8, %v1893_v18, %v1895_v21  ;;  %v1908_v8 = vsel %vm65_vm1, %v1895_v21, 0  ;;  %v1896_v22 = vsel %vm775_vm8, %v1891_v14, %v1893_v18 }
  0xcd   :  { %2327 = vmatmul.mubr.msk.bf16.vlgmr.msra.gmra.mxu0 %vm61_vm2, %v2325_v12  ;;  %v1902_v27 = vsel %vm65_vm1, %v1896_v22, 0 }
  0xce   :  { %1313 = vmatpush1.bf16.msra.mxu0 %v1290_v48  ;;  %1330 = vmatprep.mubr.bf16.mxu0 %v2547_v36 }
  0xcf   :  { %2334 = vmatprep.subr.msk.bf16.mxu0 %vm65_vm1, %v1405_v50  ;;  %v2014_v24 = vpop.permute.xlu0 %2013  ;;  %v2016_v29 = vpop.permute.xlu1 %2015 }
  0xd0   :  { %2466 = vmatmul.mubr.msk.bf16.vlgmr.msra.gmra.mxu1 %vm61_vm2, %v1166_v9  ;;  %v2019_v34 = vsel %vm900_vm9, %v2014_v24, %v2016_v29 }
  0xd1   :  { %2470 = vmatpush3.bf16.msra.mxu1 %v1416_v51  ;;  %2471 = vmatprep.mubr.msk.bf16.mxu1 %vm2545_vm0, %v2543_v4  ;;  %v2025_v38 = vsel %vm65_vm1, %v2019_v34, 0 }
  0xd2   :  { %2475 = vmatprep.subr.bf16.mxu1 %v2543_v4 }
  0xd3   :  { %v2018_v25 = vpop.permute.xlu0 %2017  ;;  %v2137_v30 = vpop.permute.xlu1 %2136 }
  0xd4   :  { %v2020_v31 = vsel %vm900_vm9, %v2016_v29, %v2018_v25  ;;  %v2031_v33 = vsel %vm65_vm1, %v2018_v25, 0 }
  0xd5   :  { %2330 = vmatmul.mubr.msk.bf16.vlgmr.msra.gmra.mxu0 %vm61_vm2, %v1166_v9 }
  0xd6   :  { %1433 = vmatpush1.bf16.msra.mxu0 %v1410_v53  ;;  %1450 = vmatprep.mubr.bf16.mxu0 %v2547_v36 }
  0xd7   :  { %2339 = vmatprep.subr.msk.bf16.mxu0 %vm65_vm1, %v1528_v55  ;;  %v2139_v35 = vpop.permute.xlu0 %2138  ;;  %v2141_v37 = vpop.permute.xlu1 %2140 }
  0xd8   :  { %2472 = vmatmul.mubr.msk.bf16.vlgmr.msra.gmra.mxu1 %vm61_vm2, %v2333_v56  ;;  %v2143_v39 = vsel %vm1025_vm10, %v2139_v35, %v2141_v37  ;;  %v2154_v40 = vsel %vm65_vm1, %v2141_v37, 0  ;;  %v2142_v41 = vsel %vm1025_vm10, %v2137_v30, %v2139_v35 }
  0xd9   :  { %2476 = vmatpush3.bf16.msra.mxu1 %v1539_v58  ;;  %2477 = vmatprep.mubr.msk.bf16.mxu1 %vm2545_vm0, %v2543_v4  ;;  %v2148_v42 = vsel %vm65_vm1, %v2142_v41, 0 }
  0xda   :  { %2481 = vmatprep.subr.bf16.mxu1 %v2543_v4 }
  0xdd   :  { %2335 = vmatmul.mubr.msk.bf16.vlgmr.msra.gmra.mxu0 %vm61_vm2, %v2333_v56 }
  0xde   :  { %1556 = vmatpush1.bf16.msra.mxu0 %v1533_v61  ;;  %1573 = vmatprep.mubr.bf16.mxu0 %v2547_v36 }
  0xdf   :  { %2344 = vmatprep.subr.msk.bf16.mxu0 %vm65_vm1, %v1651_v63 }
  0xe0   :  { %2478 = vmatmul.mubr.msk.bf16.vlgmr.msra.gmra.mxu1 %vm61_vm2, %v2338_v0 }
  0xe1   :  { %2482 = vmatpush3.bf16.msra.mxu1 %v1662_v2  ;;  %2483 = vmatprep.mubr.msk.bf16.mxu1 %vm2545_vm0, %v2543_v4 }
  0xe2   :  { %2487 = vmatprep.subr.bf16.mxu1 %v2543_v4 }
  0xe5   :  { %2340 = vmatmul.mubr.msk.bf16.vlgmr.msra.gmra.mxu0 %vm61_vm2, %v2338_v0 }
  0xe6   :  { %1679 = vmatpush1.bf16.msra.mxu0 %v1656_v13  ;;  %1696 = vmatprep.mubr.bf16.mxu0 %v2547_v36 }
  0xe7   :  { %2349 = vmatprep.subr.msk.bf16.mxu0 %vm65_vm1, %v1774_v16 }
  0xe8   :  { %2484 = vmatmul.mubr.msk.bf16.vlgmr.msra.gmra.mxu1 %vm61_vm2, %v2343_v17 }
  0xe9   :  { %2488 = vmatpush3.bf16.msra.mxu1 %v1785_v19  ;;  %2489 = vmatprep.mubr.msk.bf16.mxu1 %vm2545_vm0, %v2543_v4 }
  0xea   :  { %2493 = vmatprep.subr.bf16.mxu1 %v2543_v4 }
  0xed   :  { %2345 = vmatmul.mubr.msk.bf16.vlgmr.msra.gmra.mxu0 %vm61_vm2, %v2343_v17 }
  0xee   :  { %1802 = vmatpush1.bf16.msra.mxu0 %v1779_v23  ;;  %1819 = vmatprep.mubr.bf16.mxu0 %v2547_v36 }
  0xef   :  { %2354 = vmatprep.subr.msk.bf16.mxu0 %vm65_vm1, %v1897_v26 }
  0xf0   :  { %2490 = vmatmul.mubr.msk.bf16.vlgmr.msra.gmra.mxu1 %vm61_vm2, %v2348_v28 }
  0xf1   :  { %2494 = vmatpush3.bf16.msra.mxu1 %v1908_v8  ;;  %2495 = vmatprep.mubr.msk.bf16.mxu1 %vm2545_vm0, %v2543_v4 }
  0xf2   :  { %2499 = vmatprep.subr.bf16.mxu1 %v2543_v4 }
  0xf5   :  { %2350 = vmatmul.mubr.msk.bf16.vlgmr.msra.gmra.mxu0 %vm61_vm2, %v2348_v28 }
  0xf6   :  { %1925 = vmatpush1.bf16.msra.mxu0 %v1902_v27  ;;  %1942 = vmatprep.mubr.bf16.mxu0 %v2547_v36 }
  0xf7   :  { %2359 = vmatprep.subr.msk.bf16.mxu0 %vm65_vm1, %v2020_v31 }
  0xf8   :  { %2496 = vmatmul.mubr.msk.bf16.vlgmr.msra.gmra.mxu1 %vm61_vm2, %v2353_v32 }
  0xf9   :  { %2500 = vmatpush3.bf16.msra.mxu1 %v2031_v33  ;;  %2501 = vmatprep.mubr.msk.bf16.mxu1 %vm2545_vm0, %v2543_v4 }
  0xfa   :  { %2505 = vmatprep.subr.bf16.mxu1 %v2543_v4 }
  0xfd   :  { %2355 = vmatmul.mubr.msk.bf16.vlgmr.msra.gmra.mxu0 %vm61_vm2, %v2353_v32 }
  0xfe   :  { %2048 = vmatpush1.bf16.msra.mxu0 %v2025_v38  ;;  %2065 = vmatprep.mubr.bf16.mxu0 %v2547_v36 }
  0xff   :  { %2364 = vmatprep.subr.msk.bf16.mxu0 %vm65_vm1, %v2143_v39 }
 0x100   :  { %2502 = vmatmul.mubr.msk.bf16.vlgmr.msra.gmra.mxu1 %vm61_vm2, %v2358_v11 }
 0x101   :  { %2506 = vmatpush3.bf16.msra.mxu1 %v2154_v40  ;;  %2507 = vmatprep.mubr.msk.bf16.mxu1 %vm2545_vm0, %v2543_v4 }
 0x105   :  { %2360 = vmatmul.mubr.msk.bf16.vlgmr.msra.gmra.mxu0 %vm61_vm2, %v2358_v11 }
 0x106   :  { %2171 = vmatpush1.bf16.msra.mxu0 %v2148_v42  ;;  %2188 = vmatprep.mubr.bf16.mxu0 %v2547_v36 }
 0x108   :  { %2508 = vmatmul.mubr.msk.bf16.vlgmr.msra.gmra.mxu1 %vm61_vm2, %v2363_v43 }
 0x10d   :  { %2365 = vmatmul.mubr.msk.bf16.vlgmr.msra.gmra.mxu0 %vm61_vm2, %v2363_v43 }
 0x140   :  { %v150_v44 = vpop.f32.mrf.mxu1 }
 0x142   :  { %v2407_v10 = vpop.f32.mrf.mxu1 }
 0x144   :  { %v153_v12 = vpop.f32.mrf.mxu1 }
 0x145   :  { %v109_v45 = vpop.f32.mrf.mxu0 }
 0x146   :  { %v2408_v46 = vpop.f32.mrf.mxu1 }
 0x147   :  { %v111_v47 = vpop.f32.mrf.mxu0 }
 0x148   :  { %v243_v48 = vpop.f32.mrf.mxu1 }
 0x149   :  { %v113_v49 = vpop.f32.mrf.mxu0  ;;  %v244_v33 = vadd.f32 %v243_v48, %v150_v44 }
 0x14a   :  { %v2413_v50 = vpop.f32.mrf.mxu1 }
 0x14b   :  { %v114_v9 = vpop.f32.mrf.mxu0 }
 0x14c   :  { %v246_v15 = vpop.f32.mrf.mxu1 }
 0x14d   :  { %v202_v51 = vpop.f32.mrf.mxu0 }
 0x14e   :  { %v2414_v52 = vpop.f32.mrf.mxu1  ;;  %v203_v39 = vadd.f32 %v202_v51, %v109_v45  ;;  %v1135_v45 = vsub.s32 2, %v2589_v5 }
 0x14f   :  { %v204_v7 = vpop.f32.mrf.mxu0 }
 0x150   :  { %v365_v53 = vpop.f32.mrf.mxu1  ;;  %v205_v42 = vadd.f32 %v204_v7, %v111_v47  ;;  %v30_v47 = vld [vmem:[%s3086_s3] sm:$0x7] }
 0x151   :  { %v206_v36 = vpop.f32.mrf.mxu0  ;;  %v373_v37 = vadd.f32 %v365_v53, %v244_v33 }
 0x152   :  { %v2419_v54 = vpop.f32.mrf.mxu1 }
 0x153   :  { %v207_v55 = vpop.f32.mrf.mxu0 }
 0x154   :  { %v368_v56 = vpop.f32.mrf.mxu1 }
 0x155   :  { %v324_v57 = vpop.f32.mrf.mxu0  ;;  %v1127_v56 = vsub.s32 0, %v2589_v5 }
 0x156   :  { %v2420_v58 = vpop.f32.mrf.mxu1  ;;  %v371_v43 = vadd.f32 %v324_v57, %v203_v39 }
 0x157   :  { %v326_v59 = vpop.f32.mrf.mxu0 }
 0x158   :  { %v490_v60 = vpop.f32.mrf.mxu1  ;;  %v372_v49 = vadd.f32 %v326_v59, %v205_v42 }
 0x159   :  { %v328_v61 = vpop.f32.mrf.mxu0  ;;  %v498_v40 = vadd.f32 %v490_v60, %v373_v37 }
 0x15a   :  { %v2425_v62 = vpop.f32.mrf.mxu1 }
 0x15b   :  { %v329_v63 = vpop.f32.mrf.mxu0  ;;  %v1131_v62 = vsub.s32 1, %v2589_v5 }
 0x15c   :  { %v493_v0 = vpop.f32.mrf.mxu1 }
 0x15d   :  { %v449_v1 = vpop.f32.mrf.mxu0  ;;  %v3044_v0 = vrot.slane %v30_v47, %v1135_v45 }
 0x15e   :  { %v2426_v2 = vpop.f32.mrf.mxu1  ;;  %v496_v50 = vadd.f32 %v449_v1, %v371_v43 }
 0x15f   :  { %v451_v3 = vpop.f32.mrf.mxu0 }
 0x160   :  { %v615_v6 = vpop.f32.mrf.mxu1  ;;  %v497_v36 = vadd.f32 %v451_v3, %v372_v49 }
 0x161   :  { %v453_v13 = vpop.f32.mrf.mxu0  ;;  %v623_v12 = vadd.f32 %v615_v6, %v498_v40 }
 0x162   :  { %v2431_v14 = vpop.f32.mrf.mxu1  ;;  %v3046_v13 = vrot.slane %v30_v47, %v1127_v56 }
 0x163   :  { %v454_v16 = vpop.f32.mrf.mxu0 }
 0x164   :  { %v618_v17 = vpop.f32.mrf.mxu1 }
 0x165   :  { %v574_v18 = vpop.f32.mrf.mxu0 }
 0x166   :  { %v2432_v19 = vpop.f32.mrf.mxu1  ;;  %v621_v44 = vadd.f32 %v574_v18, %v496_v50 }
 0x167   :  { %v576_v20 = vpop.f32.mrf.mxu0  ;;  %v3048_v19 = vrot.slane %v30_v47, %v1131_v62 }
 0x168   :  { %v740_v21 = vpop.f32.mrf.mxu1  ;;  %v622_v51 = vadd.f32 %v576_v20, %v497_v36 }
 0x169   :  { %v578_v23 = vpop.f32.mrf.mxu0  ;;  %v748_v15 = vadd.f32 %v740_v21, %v623_v12 }
 0x16a   :  { %v2437_v24 = vpop.f32.mrf.mxu1 }
 0x16b   :  { %v579_v26 = vpop.f32.mrf.mxu0 }
 0x16c   :  { %v743_v28 = vpop.f32.mrf.mxu1 }
 0x16d   :  { %v699_v29 = vpop.f32.mrf.mxu0 }
 0x16e   :  { %v2438_v8 = vpop.f32.mrf.mxu1  ;;  %v746_v55 = vadd.f32 %v699_v29, %v621_v44 }
 0x16f   :  { %v701_v22 = vpop.f32.mrf.mxu0 }
 0x170   :  { %v865_v25 = vpop.f32.mrf.mxu1  ;;  %v747_v59 = vadd.f32 %v701_v22, %v622_v51 }
 0x171   :  { %v703_v27 = vpop.f32.mrf.mxu0  ;;  %v873_v54 = vadd.f32 %v865_v25, %v748_v15 }
 0x172   :  { %v2443_v30 = vpop.f32.mrf.mxu1 }
 0x173   :  { %v704_v31 = vpop.f32.mrf.mxu0 }
 0x174   :  { %v868_v32 = vpop.f32.mrf.mxu1 }
 0x175   :  { %v824_v34 = vpop.f32.mrf.mxu0 }
 0x176   :  { %v2444_v35 = vpop.f32.mrf.mxu1  ;;  %v871_v60 = vadd.f32 %v824_v34, %v746_v55 }
 0x177   :  { %v826_v38 = vpop.f32.mrf.mxu0 }
 0x178   :  { %v990_v11 = vpop.f32.mrf.mxu1  ;;  %v872_v2 = vadd.f32 %v826_v38, %v747_v59 }
 0x179   :  { %v828_v41 = vpop.f32.mrf.mxu0  ;;  %v998_v57 = vadd.f32 %v990_v11, %v873_v54 }
 0x17a   :  { %v2449_v10 = vpop.f32.mrf.mxu1 }
 0x17b   :  { %v829_v46 = vpop.f32.mrf.mxu0 }
 0x17c   :  { %v993_v9 = vpop.f32.mrf.mxu1 }
 0x17d   :  { %v949_v52 = vpop.f32.mrf.mxu0 }
 0x17e   :  { %v2450_v48 = vpop.f32.mrf.mxu1  ;;  %v996_v3 = vadd.f32 %v949_v52, %v871_v60 }
 0x17f   :  { %v951_v53 = vpop.f32.mrf.mxu0 }
 0x180   :  { %v1115_v7 = vpop.f32.mrf.mxu1  ;;  %v997_v16 = vadd.f32 %v951_v53, %v872_v2 }
 0x181   :  { %v953_v58 = vpop.f32.mrf.mxu0  ;;  %v1123_v63 = vadd.f32 %v1115_v7, %v998_v57 }
 0x182   :  { %v2455_v61 = vpop.f32.mrf.mxu1 }
 0x183   :  { %v954_v1 = vpop.f32.mrf.mxu0  ;;  %v1142_v20 = vmul.f32 %v3044_v0, %v1123_v63 }
 0x184   :  { %v1118_v6 = vpop.f32.mrf.mxu1 }
 0x185   :  { %v1074_v14 = vpop.f32.mrf.mxu0  ;;  %v1156_v8 = vmul.f32 %v1142_v20, %v1123_v63  ;;  %v1146_v33 = vsel %vm1145_vm12, %v1142_v20, 0.0 }
 0x186   :  { %v1121_v17 = vadd.f32 %v1074_v14, %v996_v3  ;;  %v2456_v18 = vpop.f32.mrf.mxu1 }
 0x187   :  { %v1076_v21 = vpop.f32.mrf.mxu0  ;;  %v1158_v39 = vsel %vm1145_vm12, %v1156_v8, 0.0 }
 0x188   :  { %v1140_v5 = vmul.f32 %v3046_v13, %v1121_v17  ;;  %v1122_v23 = vadd.f32 %v1076_v21, %v997_v16  ;;  %v3052_v24 = vpop.f32.mrf.mxu1 }
 0x189   :  { %v1078_v26 = vpop.f32.mrf.mxu0 }
 0x18a   :  { %v1141_v28 = vmul.f32 %v3048_v19, %v1122_v23  ;;  %v2461_v29 = vpop.f32.mrf.mxu1  ;;  %v1154_v25 = vmul.f32 %v1140_v5, %v1121_v17 }
 0x18b   :  { %v1079_v22 = vpop.f32.mrf.mxu0 }
 0x18c   :  { %v1155_v27 = vmul.f32 %v1141_v28, %v1122_v23  ;;  %v1283_v30 = vpop.f32.mrf.mxu1  ;;  %v1144_v31 = vadd.f32 %v1141_v28, %v1140_v5 }
 0x18d   :  { %v1239_v32 = vpop.f32.mrf.mxu0 }
 0x18e   :  { %v2462_v34 = vpop.f32.mrf.mxu1  ;;  %v1147_v35 = vadd.f32 %v1146_v33, %v1144_v31  ;;  %v1157_v37 = vadd.f32 %v1155_v27, %v1154_v25 }
 0x18f   :  { %v1241_v38 = vpop.f32.mrf.mxu0 }
 0x190   :  { %v1373_v11 = vpop.f32.mrf.mxu1  ;;  %1148 = vadd.xlane.f32.xlu0 %v1147_v35  ;;  %v1159_v40 = vadd.f32 %v1158_v39, %v1157_v37 }
 0x191   :  { %v1243_v41 = vpop.f32.mrf.mxu0  ;;  %v1374_v25 = vadd.f32 %v1373_v11, %v3052_v24 }
 0x192   :  { %v2467_v42 = vpop.f32.mrf.mxu1  ;;  %1160 = vadd.xlane.f32.xlu1 %v1159_v40 }
 0x193   :  { %v1244_v43 = vpop.f32.mrf.mxu0 }
 0x194   :  { %v1376_v10 = vpop.f32.mrf.mxu1 }
 0x195   :  { %v1332_v12 = vpop.f32.mrf.mxu0 }
 0x196   :  { %v2468_v46 = vpop.f32.mrf.mxu1  ;;  %v1333_v30 = vadd.f32 %v1332_v12, %v1239_v32 }
 0x197   :  { %v1334_v49 = vpop.f32.mrf.mxu0 }
 0x198   :  { %v1493_v50 = vpop.f32.mrf.mxu1  ;;  %v1335_v35 = vadd.f32 %v1334_v49, %v1241_v38 }
 0x199   :  { %v1336_v9 = vpop.f32.mrf.mxu0  ;;  %v1501_v33 = vadd.f32 %v1493_v50, %v1374_v25 }
 0x19a   :  { %v2473_v15 = vpop.f32.mrf.mxu1 }
 0x19b   :  { %v1337_v52 = vpop.f32.mrf.mxu0 }
 0x19c   :  { %v1496_v36 = vpop.f32.mrf.mxu1 }
 0x19d   :  { %v1452_v44 = vpop.f32.mrf.mxu0 }
 0x19e   :  { %v2474_v48 = vpop.f32.mrf.mxu1  ;;  %v1499_v37 = vadd.f32 %v1452_v44, %v1333_v30 }
 0x19f   :  { %v1454_v54 = vpop.f32.mrf.mxu0 }
 0x1a0   :  { %v1616_v53 = vpop.f32.mrf.mxu1  ;;  %v1500_v42 = vadd.f32 %v1454_v54, %v1335_v35 }
 0x1a1   :  { %v1456_v45 = vpop.f32.mrf.mxu0  ;;  %v1624_v40 = vadd.f32 %v1616_v53, %v1501_v33 }
 0x1a2   :  { %v2479_v51 = vpop.f32.mrf.mxu1 }
 0x1a3   :  { %v1457_v55 = vpop.f32.mrf.mxu0 }
 0x1a4   :  { %v1619_v47 = vpop.f32.mrf.mxu1 }
 0x1a5   :  { %v1575_v7 = vpop.f32.mrf.mxu0 }
 0x1a6   :  { %v2480_v56 = vpop.f32.mrf.mxu1  ;;  %v1622_v43 = vadd.f32 %v1575_v7, %v1499_v37 }
 0x1a7   :  { %v1577_v57 = vpop.f32.mrf.mxu0 }
 0x1a8   :  { %v1739_v58 = vpop.f32.mrf.mxu1  ;;  %v1623_v15 = vadd.f32 %v1577_v57, %v1500_v42 }
 0x1a9   :  { %v1579_v59 = vpop.f32.mrf.mxu0  ;;  %v1747_v46 = vadd.f32 %v1739_v58, %v1624_v40 }
 0x1aa   :  { %v2485_v60 = vpop.f32.mrf.mxu1 }
 0x1ab   :  { %v1580_v61 = vpop.f32.mrf.mxu0 }
 0x1ac   :  { %v1742_v62 = vpop.f32.mrf.mxu1 }
 0x1ad   :  { %v1698_v63 = vpop.f32.mrf.mxu0 }
 0x1ae   :  { %v2486_v1 = vpop.f32.mrf.mxu1  ;;  %v1745_v52 = vadd.f32 %v1698_v63, %v1622_v43 }
 0x1af   :  { %v1700_v2 = vpop.f32.mrf.mxu0 }
 0x1b0   :  { %v1862_v3 = vpop.f32.mrf.mxu1  ;;  %v1746_v11 = vadd.f32 %v1700_v2, %v1623_v15 }
 0x1b1   :  { %v1702_v6 = vpop.f32.mrf.mxu0  ;;  %v1870_v48 = vadd.f32 %v1862_v3, %v1747_v46 }
 0x1b2   :  { %v2491_v14 = vpop.f32.mrf.mxu1 }
 0x1b3   :  { %v1703_v16 = vpop.f32.mrf.mxu0 }
 0x1b4   :  { %v1865_v17 = vpop.f32.mrf.mxu1 }
 0x1b5   :  { %v1821_v18 = vpop.f32.mrf.mxu0 }
 0x1b6   :  { %v2492_v20 = vpop.f32.mrf.mxu1  ;;  %v1868_v32 = vadd.f32 %v1821_v18, %v1745_v52 }
 0x1b7   :  { %v1823_v21 = vpop.f32.mrf.mxu0 }
 0x1b8   :  { %v1985_v5 = vpop.f32.mrf.mxu1  ;;  %v1869_v38 = vadd.f32 %v1823_v21, %v1746_v11 }
 0x1b9   :  { %v1825_v23 = vpop.f32.mrf.mxu0  ;;  %v1993_v50 = vadd.f32 %v1985_v5, %v1870_v48 }
 0x1ba   :  { %v2497_v26 = vpop.f32.mrf.mxu1 }
 0x1bb   :  { %v1826_v28 = vpop.f32.mrf.mxu0 }
 0x1bc   :  { %v1988_v29 = vpop.f32.mrf.mxu1 }
 0x1bd   :  { %v1944_v8 = vpop.f32.mrf.mxu0 }
 0x1be   :  { %v2498_v22 = vpop.f32.mrf.mxu1  ;;  %v1991_v49 = vadd.f32 %v1944_v8, %v1868_v32 }
 0x1bf   :  { %v1946_v27 = vpop.f32.mrf.mxu0 }
 0x1c0   :  { %v2108_v31 = vpop.f32.mrf.mxu1  ;;  %v1992_v54 = vadd.f32 %v1946_v27, %v1869_v38 }
 0x1c1   :  { %v1948_v34 = vpop.f32.mrf.mxu0  ;;  %v2116_v53 = vadd.f32 %v2108_v31, %v1993_v50 }
 0x1c2   :  { %v2503_v39 = vpop.f32.mrf.mxu1 }
 0x1c3   :  { %v1949_v41 = vpop.f32.mrf.mxu0 }
 0x1c4   :  { %v2111_v10 = vpop.f32.mrf.mxu1  ;;  %v2271_v41 = vld [vmem:[%s3088_s1] sm:$0xff] }
 0x1c5   :  { %v2067_v9 = vpop.f32.mrf.mxu0  ;;  %v2275_v10 = vld [vmem:[%s3089_s2] sm:$0xff] }
 0x1c6   :  { %v2504_v36 = vpop.f32.mrf.mxu1  ;;  %v2114_v55 = vadd.f32 %v2067_v9, %v1991_v49 }
 0x1c7   :  { %v2069_v24 = vpop.f32.mrf.mxu0 }
 0x1c8   :  { %v2231_v12 = vpop.f32.mrf.mxu1  ;;  %v2115_v57 = vadd.f32 %v2069_v24, %v1992_v54 }
 0x1c9   :  { %v2071_v45 = vpop.f32.mrf.mxu0  ;;  %v2239_v7 = vadd.f32 %v2231_v12, %v2116_v53 }
 0x1ca   :  { %v2509_v44 = vpop.f32.mrf.mxu1 }
 0x1cb   :  { %v2072_v51 = vpop.f32.mrf.mxu0  ;;  %v2242_v63 = vmul.f32 %v2239_v7, %v3044_v0  ;;  %v1143_v0 = vld [vmem:[#allocation2] sm:$0xff] }
 0x1cc   :  { %v2234_v47 = vpop.f32.mrf.mxu1 }
 0x1cd   :  { %v2190_v56 = vpop.f32.mrf.mxu0  ;;  %v2254_v17 = vmul.f32 %v2242_v63, %v2239_v7  ;;  %v2245_v18 = vsel %vm1145_vm12, %v2242_v63, 0.0 }
 0x1ce   :  { %v2237_v58 = vadd.f32 %v2190_v56, %v2114_v55  ;;  %v2510_v59 = vpop.f32.mrf.mxu1 }
 0x1cf   :  { %v2192_v60 = vpop.f32.mrf.mxu0  ;;  %v2256_v5 = vsel %vm1145_vm12, %v2254_v17, 0.0 }
 0x1d0   :  { %v2240_v61 = vmul.f32 %v2237_v58, %v3046_v13  ;;  %v2238_v62 = vadd.f32 %v2192_v60, %v2115_v57 }
 0x1d1   :  { %v2194_v1 = vpop.f32.mrf.mxu0 }
 0x1d2   :  { %v2241_v2 = vmul.f32 %v2238_v62, %v3048_v19  ;;  %v2252_v6 = vmul.f32 %v2240_v61, %v2237_v58  ;;  %v1153_v19 = vld [vmem:[#allocation3] sm:$0xff] }
 0x1d3   :  { %v2195_v3 = vpop.f32.mrf.mxu0 }
 0x1d4   :  { %v2253_v14 = vmul.f32 %v2241_v2, %v2238_v62  ;;  %v2244_v16 = vadd.f32 %v2241_v2, %v2240_v61 }
 0x1d6   :  { %v2246_v20 = vadd.f32 %v2245_v18, %v2244_v16  ;;  %v2255_v21 = vadd.f32 %v2253_v14, %v2252_v6 }
 0x1d8   :  { %2247 = vadd.xlane.f32.xlu0 %v2246_v20  ;;  %v2257_v23 = vadd.f32 %v2256_v5, %v2255_v21 }
 0x1dc   :  { %2258 = vadd.xlane.f32.xlu0 %v2257_v23 }
 0x219   :  { %v1149_v13 = vpop.xlane.xlu0 %1148 }
 0x21a   :  { %v1150_v26 = vadd.f32 %v1149_v13, %v1143_v0 }
 0x21b   :  { %v1161_v28 = vpop.xlane.xlu1 %1160 }
 0x21c   :  { %1152 = vst.msk [vmem:[#allocation2] sm:$0xff] %vm25_vm11, %v1150_v26  ;;  %v1162_v29 = vadd.f32 %v1161_v28, %v1153_v19 }
 0x21e   :  { %1163 = vst.msk [vmem:[#allocation3] sm:$0xff] %vm25_vm11, %v1162_v29 }
 0x223   :  { %v2243_v8 = vld [vmem:[#allocation2] sm:$0xff] }
 0x225   :  { %v2251_v27 = vld [vmem:[#allocation3] sm:$0xff] }
 0x261   :  { %v2248_v22 = vpop.xlane.xlu0 %2247 }
 0x262   :  { %v2249_v25 = vadd.f32 %v2248_v22, %v2243_v8 }
 0x264   :  { %2250 = vst.msk [vmem:[#allocation2] sm:$0xff] %vm25_vm11, %v2249_v25 }
 0x265   :  { %v2259_v30 = vpop.xlane.xlu0 %2258 }
 0x266   :  { %v2260_v31 = vadd.f32 %v2259_v30, %v2251_v27 }
 0x268   :  { %2261 = vst.msk [vmem:[#allocation3] sm:$0xff] %vm25_vm11, %v2260_v31 }
 0x26b   :  { %v2265_v4 = vld [vmem:[#allocation2] sm:$0xff] }
 0x26c   :  { %v2266_v33 = vmul.f32 0.001953125, %v2265_v4 }
 0x26e   :  { %v2269_v37 = vmul.f32 %v2266_v33, %v2266_v33 }
 0x26f   :  { %v2267_v34 = vld [vmem:[#allocation3] sm:$0xff] }
 0x270   :  { %v2268_v35 = vmul.f32 0.001953125, %v2267_v34 }
 0x272   :  { %v2270_v39 = vsub.f32 %v2268_v35, %v2269_v37 }
 0x274   :  { %v2272_v40 = vadd.f32 1e-05, %v2270_v39 }
 0x276   :  { %2540 = vrsqrt.f32 %v2272_v40 }
 0x283   :  { %v2541_v42 = vpop.eup %2540 }
 0x284   :  { %v2274_v43 = vmul.f32 %v2541_v42, %v2271_v41 }
 0x286   :  { %v2276_v46 = vmul.f32 %v2274_v43, %v2266_v33  ;;  %2278 = vst.msk [vmem:[%s3087_s5] sm:$0xff] %vm25_vm11, %v2274_v43 }
 0x288   :  { %v2277_v9 = vsub.f32 %v2275_v10, %v2276_v46 }
 0x28a   :  { %2280 = vrot.lane.b32.xlu1 %v2277_v9, %s2554_s26 }
 0x2fc   :  { %v2281_v15 = vpop.permute.xlu1 %2280 }
 0x2fd   :  { %2284 = vst.msk [vmem:[%s3087_s5] sm:$0xff] %vm2283_vm14, %v2281_v15 }

</bundles_post_ra>
